<compile_context>
chip_gen: v7x
topology: tpu7x:2x2x1
jax: 0.10.0
libtpu: 0.0.40
codegen_flags: <defaults>
</compile_context>

<pallas_src>
import functools

import jax
import jax.numpy as jnp
from jax.experimental import pallas as pl
from jax.experimental.pallas import tpu as pltpu


def _round_up(x, m):
    return ((x + m - 1) // m) * m


def _generator_kernel(z_ref, w1_ref, b1_ref, w2_ref, b2_ref, w3_ref, b3_ref,
                      out_ref):
    # z arrives f32 at its natural [tb, in_dim]; cast to bf16 for the MXU.
    z = z_ref[...].astype(jnp.bfloat16)

    # Layer 1: bf16 MXU matmul, f32 accumulation; bias + ReLU in f32 on VPU.
    h1 = jnp.dot(z, w1_ref[...], preferred_element_type=jnp.float32)
    h1 = jnp.maximum(h1 + b1_ref[...], 0.0).astype(jnp.bfloat16)

    # Layer 2: same pattern.
    h2 = jnp.dot(h1, w2_ref[...], preferred_element_type=jnp.float32)
    h2 = jnp.maximum(h2 + b2_ref[...], 0.0).astype(jnp.bfloat16)

    # Layer 3: no activation; store f32 at the true output width.
    y = jnp.dot(h2, w3_ref[...], preferred_element_type=jnp.float32)
    out_ref[...] = y + b3_ref[...]


def prepare_params(params):
    """One-time parameter prep (do NOT call per forward):
    weights -> bf16 [in, out], biases -> f32 [1, out]."""
    return {
        "W1": jnp.asarray(params["W1"], jnp.bfloat16),
        "W2": jnp.asarray(params["W2"], jnp.bfloat16),
        "W3": jnp.asarray(params["W3"], jnp.bfloat16),
        "b1": jnp.asarray(params["b1"], jnp.float32).reshape(1, -1),
        "b2": jnp.asarray(params["b2"], jnp.float32).reshape(1, -1),
        "b3": jnp.asarray(params["b3"], jnp.float32).reshape(1, -1),
    }


@functools.partial(jax.jit, static_argnames=("block_batch",))
def generator_forward(z, prepared, *, block_batch=1024):
    """z: [B, input_dim] float32. prepared: output of prepare_params()."""
    w1, b1 = prepared["W1"], prepared["b1"]
    w2, b2 = prepared["W2"], prepared["b2"]
    w3, b3 = prepared["W3"], prepared["b3"]

    B, in_dim = z.shape
    hidden = w1.shape[1]
    out_dim = w3.shape[1]

    # Adaptive batch tile: single grid step for small batches, block_batch
    # (multiple of 8) rows per step for large batches.
    b8 = _round_up(B, 8)
    tb = b8 if b8 <= block_batch else _round_up(block_batch, 8)
    b_pad = _round_up(B, tb)

    zp = z
    if b_pad != B:
        zp = jnp.zeros((b_pad, in_dim), z.dtype).at[:B].set(z)

    grid = (b_pad // tb,)

    # Constant block index -> weights/biases stay VMEM-resident across steps.
    full_block = lambda a: pl.BlockSpec(a.shape, lambda i: (0, 0))

    flops = 2 * b_pad * (in_dim * hidden + hidden * hidden + hidden * out_dim)
    bytes_accessed = (
        b_pad * in_dim * 4 + b_pad * out_dim * 4            # z in, out back
        + (w1.size + w2.size + w3.size) * 2                  # bf16 weights
        + (b1.size + b2.size + b3.size) * 4)                 # f32 biases

    out = pl.pallas_call(
        _generator_kernel,
        out_shape=jax.ShapeDtypeStruct((b_pad, out_dim), jnp.float32),
        grid=grid,
        in_specs=[
            pl.BlockSpec((tb, in_dim), lambda i: (i, 0)),    # z: batch-tiled
            full_block(w1), full_block(b1),
            full_block(w2), full_block(b2),
            full_block(w3), full_block(b3),
        ],
        out_specs=pl.BlockSpec((tb, out_dim), lambda i: (i, 0)),
        compiler_params=pltpu.CompilerParams(
            dimension_semantics=("parallel",),               # megacore on v7x
        ),
        cost_estimate=pl.CostEstimate(
            flops=flops, transcendentals=0, bytes_accessed=bytes_accessed),
    )(zp, w1, b1, w2, b2, w3, b3)

    if b_pad != B:
        out = out[:B]
    return out


def init_generator_params(key, input_dim, output_dim, hidden_dim=128):
    """Deterministic init. Weights stored as [in, out] (transposed vs torch)."""
    ks = jax.random.split(key, 6)

    def linear(kw, kb, fan_in, fan_out):
        # PyTorch nn.Linear default: U(-1/sqrt(fan_in), 1/sqrt(fan_in))
        bound = 1.0 / jnp.sqrt(fan_in)
        w = jax.random.uniform(kw, (fan_in, fan_out), jnp.float32, -bound, bound)
        b = jax.random.uniform(kb, (1, fan_out), jnp.float32, -bound, bound)
        return w, b

    w1, b1 = linear(ks[0], ks[1], input_dim, hidden_dim)
    w2, b2 = linear(ks[2], ks[3], hidden_dim, hidden_dim)
    w3, b3 = linear(ks[4], ks[5], hidden_dim, output_dim)
    return {"W1": w1, "b1": b1, "W2": w2, "b2": b2, "W3": w3, "b3": b3}


if __name__ == "__main__":
    key = jax.random.PRNGKey(0)
    k_z, k_p = jax.random.split(key)

    batch = 512
    input_dim = 16
    hidden_dim = 128
    output_dim = 16

    z = jax.random.normal(k_z, (batch, input_dim), dtype=jnp.float32)
    params = init_generator_params(k_p, input_dim, output_dim, hidden_dim)

    prepared = prepare_params(params)          # one-time weight prep (hoisted)
    out = generator_forward(z, prepared)
    out = jax.block_until_ready(out)

    # Reference check in plain f32 JAX (same math as the PyTorch forward).
    # Tolerance relaxed because kernel feeds bf16 operands to the MXU
    # (accumulation is f32, so error stays O(1e-2) absolute at these scales).
    h1 = jnp.maximum(z @ params["W1"] + params["b1"], 0.0)
    h2 = jnp.maximum(h1 @ params["W2"] + params["b2"], 0.0)
    ref = h2 @ params["W3"] + params["b3"]

    assert out.shape == (batch, output_dim)
    assert jnp.allclose(out, ref, atol=5e-2, rtol=5e-2), (
        float(jnp.max(jnp.abs(out - ref))))

    print("KERNEL_OK")
</pallas_src>

<mosaic_0001>
module attributes {stable_mosaic.version = 11 : i64} {
  func.func @_generator_kernel(%arg0: i32, %arg1: memref<512x16xf32, #tpu.memory_space<vmem>>, %arg2: memref<16x128xbf16, #tpu.memory_space<vmem>>, %arg3: memref<1x128xf32, #tpu.memory_space<vmem>>, %arg4: memref<128x128xbf16, #tpu.memory_space<vmem>>, %arg5: memref<1x128xf32, #tpu.memory_space<vmem>>, %arg6: memref<128x16xbf16, #tpu.memory_space<vmem>>, %arg7: memref<1x16xf32, #tpu.memory_space<vmem>>, %arg8: memref<512x16xf32, #tpu.memory_space<vmem>>) attributes {dimension_semantics = [#tpu.dimension_semantics<parallel>], iteration_bounds = array<i64: 1>, scalar_prefetch = 0 : i64, scratch_operands = 0 : i64, tpu.core_type = #tpu.core_type<tc>, window_params = [{transform_indices = @transform_0, window_bounds = array<i64: 512, 16>}, {pipeline_mode = #tpu.pipeline_mode<synchronous>, transform_indices = @transform_1, window_bounds = array<i64: 16, 128>}, {pipeline_mode = #tpu.pipeline_mode<synchronous>, transform_indices = @transform_2, window_bounds = array<i64: 1, 128>}, {pipeline_mode = #tpu.pipeline_mode<synchronous>, transform_indices = @transform_3, window_bounds = array<i64: 128, 128>}, {pipeline_mode = #tpu.pipeline_mode<synchronous>, transform_indices = @transform_4, window_bounds = array<i64: 1, 128>}, {pipeline_mode = #tpu.pipeline_mode<synchronous>, transform_indices = @transform_5, window_bounds = array<i64: 128, 16>}, {pipeline_mode = #tpu.pipeline_mode<synchronous>, transform_indices = @transform_6, window_bounds = array<i64: 1, 16>}, {transform_indices = @transform_7, window_bounds = array<i64: 512, 16>}]} {
    %c0 = arith.constant 0 : index
    %c0_0 = arith.constant 0 : index
    %0 = vector.load %arg1[%c0, %c0_0] : memref<512x16xf32, #tpu.memory_space<vmem>>, vector<512x16xf32>
    %1 = arith.truncf %0 : vector<512x16xf32> to vector<512x16xbf16>
    %c0_1 = arith.constant 0 : index
    %c0_2 = arith.constant 0 : index
    %2 = vector.load %arg2[%c0_1, %c0_2] : memref<16x128xbf16, #tpu.memory_space<vmem>>, vector<16x128xbf16>
    %cst = arith.constant dense<0.000000e+00> : vector<512x128xf32>
    %3 = tpu.matmul %1, %2, %cst {dimension_numbers = #tpu.dot_dimension_numbers<[1], [0], [0], [1], [0, 0, 1, 1], [], []>} : vector<512x16xbf16>, vector<16x128xbf16>, vector<512x128xf32> -> vector<512x128xf32>
    %c0_3 = arith.constant 0 : index
    %c0_4 = arith.constant 0 : index
    %4 = vector.load %arg3[%c0_3, %c0_4] : memref<1x128xf32, #tpu.memory_space<vmem>>, vector<1x128xf32>
    %5 = vector.broadcast %4 : vector<1x128xf32> to vector<512x128xf32>
    %6 = arith.addf %3, %5 : vector<512x128xf32>
    %cst_5 = arith.constant 0.000000e+00 : f32
    %7 = vector.broadcast %cst_5 : f32 to vector<512x128xf32>
    %8 = arith.maximumf %6, %7 : vector<512x128xf32>
    %9 = arith.truncf %8 : vector<512x128xf32> to vector<512x128xbf16>
    %c0_6 = arith.constant 0 : index
    %c0_7 = arith.constant 0 : index
    %10 = vector.load %arg4[%c0_6, %c0_7] : memref<128x128xbf16, #tpu.memory_space<vmem>>, vector<128x128xbf16>
    %cst_8 = arith.constant dense<0.000000e+00> : vector<512x128xf32>
    %11 = tpu.matmul %9, %10, %cst_8 {dimension_numbers = #tpu.dot_dimension_numbers<[1], [0], [0], [1], [0, 0, 1, 1], [], []>} : vector<512x128xbf16>, vector<128x128xbf16>, vector<512x128xf32> -> vector<512x128xf32>
    %c0_9 = arith.constant 0 : index
    %c0_10 = arith.constant 0 : index
    %12 = vector.load %arg5[%c0_9, %c0_10] : memref<1x128xf32, #tpu.memory_space<vmem>>, vector<1x128xf32>
    %13 = vector.broadcast %12 : vector<1x128xf32> to vector<512x128xf32>
    %14 = arith.addf %11, %13 : vector<512x128xf32>
    %cst_11 = arith.constant 0.000000e+00 : f32
    %15 = vector.broadcast %cst_11 : f32 to vector<512x128xf32>
    %16 = arith.maximumf %14, %15 : vector<512x128xf32>
    %17 = arith.truncf %16 : vector<512x128xf32> to vector<512x128xbf16>
    %c0_12 = arith.constant 0 : index
    %c0_13 = arith.constant 0 : index
    %18 = vector.load %arg6[%c0_12, %c0_13] : memref<128x16xbf16, #tpu.memory_space<vmem>>, vector<128x16xbf16>
    %cst_14 = arith.constant dense<0.000000e+00> : vector<512x16xf32>
    %19 = tpu.matmul %17, %18, %cst_14 {dimension_numbers = #tpu.dot_dimension_numbers<[1], [0], [0], [1], [0, 0, 1, 1], [], []>} : vector<512x128xbf16>, vector<128x16xbf16>, vector<512x16xf32> -> vector<512x16xf32>
    %c0_15 = arith.constant 0 : index
    %c0_16 = arith.constant 0 : index
    %20 = vector.load %arg7[%c0_15, %c0_16] : memref<1x16xf32, #tpu.memory_space<vmem>>, vector<1x16xf32>
    %21 = vector.broadcast %20 : vector<1x16xf32> to vector<512x16xf32>
    %22 = arith.addf %19, %21 : vector<512x16xf32>
    %c0_17 = arith.constant 0 : index
    %c0_18 = arith.constant 0 : index
    %23 = vector.load %arg8[%c0_17, %c0_18] : memref<512x16xf32, #tpu.memory_space<vmem>>, vector<512x16xf32>
    tpu.vector_store %arg8[%c0_17, %c0_18], %22 {strides = array<i32>} : memref<512x16xf32, #tpu.memory_space<vmem>>, vector<512x16xf32>,
    return
  }
  func.func @transform_0(%arg0: i32) -> (i32, i32) {
    %c0_i32 = arith.constant 0 : i32
    %c0_i32_0 = arith.constant 0 : i32
    return %arg0, %c0_i32 : i32, i32
  }
  func.func @transform_1(%arg0: i32) -> (i32, i32) {
    %c0_i32 = arith.constant 0 : i32
    %c0_i32_0 = arith.constant 0 : i32
    %c0_i32_1 = arith.constant 0 : i32
    return %c0_i32, %c0_i32_0 : i32, i32
  }
  func.func @transform_2(%arg0: i32) -> (i32, i32) {
    %c0_i32 = arith.constant 0 : i32
    %c0_i32_0 = arith.constant 0 : i32
    %c0_i32_1 = arith.constant 0 : i32
    return %c0_i32, %c0_i32_0 : i32, i32
  }
  func.func @transform_3(%arg0: i32) -> (i32, i32) {
    %c0_i32 = arith.constant 0 : i32
    %c0_i32_0 = arith.constant 0 : i32
    %c0_i32_1 = arith.constant 0 : i32
    return %c0_i32, %c0_i32_0 : i32, i32
  }
  func.func @transform_4(%arg0: i32) -> (i32, i32) {
    %c0_i32 = arith.constant 0 : i32
    %c0_i32_0 = arith.constant 0 : i32
    %c0_i32_1 = arith.constant 0 : i32
    return %c0_i32, %c0_i32_0 : i32, i32
  }
  func.func @transform_5(%arg0: i32) -> (i32, i32) {
    %c0_i32 = arith.constant 0 : i32
    %c0_i32_0 = arith.constant 0 : i32
    %c0_i32_1 = arith.constant 0 : i32
    return %c0_i32, %c0_i32_0 : i32, i32
  }
  func.func @transform_6(%arg0: i32) -> (i32, i32) {
    %c0_i32 = arith.constant 0 : i32
    %c0_i32_0 = arith.constant 0 : i32
    %c0_i32_1 = arith.constant 0 : i32
    return %c0_i32, %c0_i32_0 : i32, i32
  }
  func.func @transform_7(%arg0: i32) -> (i32, i32) {
    %c0_i32 = arith.constant 0 : i32
    %c0_i32_0 = arith.constant 0 : i32
    return %arg0, %c0_i32 : i32, i32
  }
}

</mosaic_0001>

<bundles_post_ra>
// kernel: generator_forward.1
= control target key start
LH: loop header
LB: loop body
LE: loop exit
PB: predicated region body
PF: predicated region fallthrough
CT: control target
= control target key end

     0   :  { %vm138_vm0 = vcmask 130048   ;;  %s2722_s1 = inlined_call_operand.vmem [shape: bf16[16,128], index: 1, kind: input, shape index: {}]   ;;  %s2723_s0 = inlined_call_operand.vmem [shape: f32[512,16], index: 0, kind: input, shape index: {}]   ;;  %s2724_s3 = inlined_call_operand.vmem [shape: bf16[128,128], index: 3, kind: input, shape index: {}]   ;;  %s2725_s2 = inlined_call_operand.vmem [shape: f32[1,128], index: 2, kind: input, shape index: {}]   ;;  %s2726_s5 = inlined_call_operand.vmem [shape: bf16[128,16], index: 5, kind: input, shape index: {}]   ;;  %s2727_s4 = inlined_call_operand.vmem [shape: f32[1,128], index: 4, kind: input, shape index: {}]   ;;  %s2728_s6 = inlined_call_operand.vmem [shape: f32[1,16], index: 6, kind: input, shape index: {}]   ;;  %s2729_s7 = inlined_call_operand.vmem [shape: f32[512,16], index: 7, kind: output, shape index: {}]  }
   0x1   :  { %v1897_v0 = vld [vmem:[%s2722_s1] sm:$0xff]   ;;  %v28_v2 = vld [vmem:[%s2723_s0 + $0x8] sm:$0xff]  ;;  %v29_v3 = vld [vmem:[%s2723_s0 + $0x10] sm:$0xff] }
   0x2   :  { %v27_v1 = vld [vmem:[%s2723_s0] sm:$0xff]  ;;  %1669 = vmatprep.subr.bf16.mxu0 %v1897_v0  ;;  %v30_v5 = vld [vmem:[%s2723_s0 + $0x18] sm:$0xff]  ;;  %v32_v7 = vld [vmem:[%s2723_s0 + $0x28] sm:$0xff]  ;;  %1895 = vmatprep.subr.bf16.mxu1 %v1897_v0 }
   0x3   :  { %v91_v4 = vpack.c.bf16 %v28_v2, %v27_v1  ;;  %v31_v6 = vld [vmem:[%s2723_s0 + $0x20] sm:$0xff]  ;;  %1670 = vmatpush3.bf16.msra.mxu0 %v1897_v0  ;;  %v92_v8 = vpack.c.bf16 %v30_v5, %v29_v3  ;;  %1896 = vmatpush3.bf16.msra.mxu1 %v1897_v0  ;;  %v33_v10 = vld [vmem:[%s2723_s0 + $0x30] sm:$0xff]  ;;  %v34_v11 = vld [vmem:[%s2723_s0 + $0x38] sm:$0xff] }
   0x4   :  { %v93_v9 = vpack.c.bf16 %v32_v7, %v31_v6  ;;  %v35_v12 = vld [vmem:[%s2723_s0 + $0x40] sm:$0xff]  ;;  %v36_v13 = vld [vmem:[%s2723_s0 + $0x48] sm:$0xff]  ;;  %v94_v14 = vpack.c.bf16 %v34_v11, %v33_v10  ;;  %v61_v18 = vld [vmem:[%s2723_s0 + $0x110] sm:$0xff] }
   0x5   :  { %1671 = vmatprep.mubr.msk.bf16.mxu0 %vm138_vm0, %v91_v4  ;;  %v95_v15 = vpack.c.bf16 %v36_v13, %v35_v12  ;;  %v59_v16 = vld [vmem:[%s2723_s0 + $0x100] sm:$0xff]  ;;  %v60_v17 = vld [vmem:[%s2723_s0 + $0x108] sm:$0xff]  ;;  %v62_v19 = vld [vmem:[%s2723_s0 + $0x118] sm:$0xff] }
   0x6   :  { %1672 = vmatmul.mubr.msk.bf16.vlgmr.msra.gmra.mrb[0].mxu0 %vm138_vm0, %v92_v8  ;;  %v107_v20 = vpack.c.bf16 %v60_v17, %v59_v16  ;;  %v108_v21 = vpack.c.bf16 %v62_v19, %v61_v18  ;;  %v63_v22 = vld [vmem:[%s2723_s0 + $0x120] sm:$0xff]  ;;  %v64_v23 = vld [vmem:[%s2723_s0 + $0x128] sm:$0xff]  ;;  %v37_v25 = vld [vmem:[%s2723_s0 + $0x50] sm:$0xff] }
   0x7   :  { %1675 = vmatprep.mubr.msk.bf16.mxu0 %vm138_vm0, %v93_v9  ;;  %v109_v24 = vpack.c.bf16 %v64_v23, %v63_v22  ;;  %v38_v26 = vld [vmem:[%s2723_s0 + $0x58] sm:$0xff]  ;;  %v39_v27 = vld [vmem:[%s2723_s0 + $0x60] sm:$0xff]  ;;  %v40_v28 = vld [vmem:[%s2723_s0 + $0x68] sm:$0xff] }
   0x8   :  { %1703 = vmatprep.mubr.msk.bf16.mxu1 %vm138_vm0, %v107_v20  ;;  %v65_v29 = vld [vmem:[%s2723_s0 + $0x130] sm:$0xff]  ;;  %v66_v30 = vld [vmem:[%s2723_s0 + $0x138] sm:$0xff]  ;;  %v96_v31 = vpack.c.bf16 %v38_v26, %v37_v25  ;;  %v67_v32 = vld [vmem:[%s2723_s0 + $0x140] sm:$0xff]  ;;  %v97_v34 = vpack.c.bf16 %v40_v28, %v39_v27 }
   0x9   :  { %1704 = vmatmul.mubr.msk.bf16.vlgmr.msra.gmra.mrb[0].mxu1 %vm138_vm0, %v108_v21  ;;  %v68_v33 = vld [vmem:[%s2723_s0 + $0x148] sm:$0xff]  ;;  %v110_v35 = vpack.c.bf16 %v66_v30, %v65_v29  ;;  %v41_v36 = vld [vmem:[%s2723_s0 + $0x70] sm:$0xff]  ;;  %v42_v37 = vld [vmem:[%s2723_s0 + $0x78] sm:$0xff] }
   0xa   :  { %1707 = vmatprep.mubr.msk.bf16.mxu1 %vm138_vm0, %v109_v24  ;;  %v111_v38 = vpack.c.bf16 %v68_v33, %v67_v32  ;;  %v43_v39 = vld [vmem:[%s2723_s0 + $0x80] sm:$0xff]  ;;  %v44_v40 = vld [vmem:[%s2723_s0 + $0x88] sm:$0xff]  ;;  %v69_v41 = vld [vmem:[%s2723_s0 + $0x150] sm:$0xff]  ;;  %v98_v46 = vpack.c.bf16 %v42_v37, %v41_v36 }
   0xb   :  { %v70_v42 = vld [vmem:[%s2723_s0 + $0x158] sm:$0xff]  ;;  %v1898_v43 = vld [vmem:[%s2724_s3] sm:$0xff]   ;;  %v1899_v44 = vld [vmem:[%s2724_s3 + $0x8] sm:$0xff]   ;;  %v99_v48 = vpack.c.bf16 %v44_v40, %v43_v39 }
   0xc   :  { %v71_v45 = vld [vmem:[%s2723_s0 + $0x160] sm:$0xff]  ;;  %1735 = vmatprep.subr.bf16.mxu1 %v1898_v43  ;;  %v72_v47 = vld [vmem:[%s2723_s0 + $0x168] sm:$0xff]  ;;  %v1900_v49 = vld [vmem:[%s2724_s3 + $0x10] sm:$0xff]   ;;  %v112_v50 = vpack.c.bf16 %v70_v42, %v69_v41 }
   0xd   :  { %1736 = vmatpush3.bf16.msra.mxu1 %v1898_v43  ;;  %v113_v51 = vpack.c.bf16 %v72_v47, %v71_v45  ;;  %v45_v52 = vld [vmem:[%s2723_s0 + $0x90] sm:$0xff]  ;;  %v46_v53 = vld [vmem:[%s2723_s0 + $0x98] sm:$0xff]  ;;  %v47_v55 = vld [vmem:[%s2723_s0 + $0xa0] sm:$0xff] }
   0xe   :  { %1676 = vmatmul.mubr.msk.bf16.gmra.mrb[4].mxu0 %vm138_vm0, %v94_v14  ;;  %1737 = vmatprep.subr.bf16.mxu1 %v1899_v44  ;;  %v1901_v54 = vld [vmem:[%s2724_s3 + $0x18] sm:$0xff]   ;;  %v48_v56 = vld [vmem:[%s2723_s0 + $0xa8] sm:$0xff]  ;;  %v73_v57 = vld [vmem:[%s2723_s0 + $0x170] sm:$0xff]  ;;  %v100_v59 = vpack.c.bf16 %v46_v53, %v45_v52 }
   0xf   :  { %1679 = vmatprep.mubr.msk.bf16.mxu0 %vm138_vm0, %v95_v15  ;;  %v74_v58 = vld [vmem:[%s2723_s0 + $0x178] sm:$0xff]  ;;  %v75_v60 = vld [vmem:[%s2723_s0 + $0x180] sm:$0xff]  ;;  %v76_v61 = vld [vmem:[%s2723_s0 + $0x188] sm:$0xff]  ;;  %v101_v62 = vpack.c.bf16 %v48_v56, %v47_v55 }
  0x10   :  { %v1902_v63 = vld [vmem:[%s2724_s3 + $0x20] sm:$0xff]   ;;  %v114_v0 = vpack.c.bf16 %v74_v58, %v73_v57  ;;  %v115_v1 = vpack.c.bf16 %v76_v61, %v75_v60  ;;  %v49_v2 = vld [vmem:[%s2723_s0 + $0xb0] sm:$0xff]  ;;  %v50_v3 = vld [vmem:[%s2723_s0 + $0xb8] sm:$0xff] }
  0x11   :  { %1708 = vmatmul.mubr.msk.bf16.gmra.mrb[4].mxu1 %vm138_vm0, %v110_v35  ;;  %v1903_v4 = vld [vmem:[%s2724_s3 + $0x28] sm:$0xff]   ;;  %v51_v5 = vld [vmem:[%s2723_s0 + $0xc0] sm:$0xff]  ;;  %v77_v7 = vld [vmem:[%s2723_s0 + $0x190] sm:$0xff]  ;;  %v102_v9 = vpack.c.bf16 %v50_v3, %v49_v2 }
  0x12   :  { %1711 = vmatprep.mubr.msk.bf16.mxu1 %vm138_vm0, %v111_v38  ;;  %1738 = vmatpush3.bf16.msra.mxu1 %v1899_v44  ;;  %v52_v6 = vld [vmem:[%s2723_s0 + $0xc8] sm:$0xff]  ;;  %v78_v8 = vld [vmem:[%s2723_s0 + $0x198] sm:$0xff]  ;;  %v79_v10 = vld [vmem:[%s2723_s0 + $0x1a0] sm:$0xff] }
  0x13   :  { %1739 = vmatprep.subr.bf16.mxu1 %v1900_v49  ;;  %v80_v11 = vld [vmem:[%s2723_s0 + $0x1a8] sm:$0xff]  ;;  %v103_v12 = vpack.c.bf16 %v52_v6, %v51_v5  ;;  %v1904_v13 = vld [vmem:[%s2724_s3 + $0x30] sm:$0xff]   ;;  %v116_v14 = vpack.c.bf16 %v78_v8, %v77_v7  ;;  %v54_v17 = vld [vmem:[%s2723_s0 + $0xd8] sm:$0xff] }
  0x14   :  { %v117_v15 = vpack.c.bf16 %v80_v11, %v79_v10  ;;  %v53_v16 = vld [vmem:[%s2723_s0 + $0xd0] sm:$0xff]  ;;  %v55_v18 = vld [vmem:[%s2723_s0 + $0xe0] sm:$0xff]  ;;  %v56_v19 = vld [vmem:[%s2723_s0 + $0xe8] sm:$0xff] }
  0x15   :  { %v81_v20 = vld [vmem:[%s2723_s0 + $0x1b0] sm:$0xff]  ;;  %v82_v21 = vld [vmem:[%s2723_s0 + $0x1b8] sm:$0xff]  ;;  %v104_v22 = vpack.c.bf16 %v54_v17, %v53_v16  ;;  %v83_v23 = vld [vmem:[%s2723_s0 + $0x1c0] sm:$0xff]  ;;  %v105_v25 = vpack.c.bf16 %v56_v19, %v55_v18 }
  0x16   :  { %1680 = vmatmul.mubr.msk.bf16.gmra.mrb[8].mxu0 %vm138_vm0, %v96_v31  ;;  %1740 = vmatpush3.bf16.msra.mxu1 %v1900_v49  ;;  %v84_v24 = vld [vmem:[%s2723_s0 + $0x1c8] sm:$0xff]  ;;  %v118_v26 = vpack.c.bf16 %v82_v21, %v81_v20  ;;  %v57_v28 = vld [vmem:[%s2723_s0 + $0xf0] sm:$0xff]  ;;  %v58_v29 = vld [vmem:[%s2723_s0 + $0xf8] sm:$0xff] }
  0x17   :  { %1683 = vmatprep.mubr.msk.bf16.mxu0 %vm138_vm0, %v97_v34  ;;  %1741 = vmatprep.subr.bf16.mxu1 %v1901_v54  ;;  %v119_v27 = vpack.c.bf16 %v84_v24, %v83_v23  ;;  %v85_v30 = vld [vmem:[%s2723_s0 + $0x1d0] sm:$0xff]  ;;  %v86_v31 = vld [vmem:[%s2723_s0 + $0x1d8] sm:$0xff]  ;;  %v106_v32 = vpack.c.bf16 %v58_v29, %v57_v28  ;;  %v87_v33 = vld [vmem:[%s2723_s0 + $0x1e0] sm:$0xff] }
  0x18   :  { %v88_v34 = vld [vmem:[%s2723_s0 + $0x1e8] sm:$0xff]  ;;  %v120_v35 = vpack.c.bf16 %v86_v31, %v85_v30  ;;  %v89_v37 = vld [vmem:[%s2723_s0 + $0x1f0] sm:$0xff]  ;;  %v90_v38 = vld [vmem:[%s2723_s0 + $0x1f8] sm:$0xff] }
  0x19   :  { %1712 = vmatmul.mubr.msk.bf16.gmra.mrb[8].mxu1 %vm138_vm0, %v112_v50  ;;  %v121_v36 = vpack.c.bf16 %v88_v34, %v87_v33  ;;  %v122_v39 = vpack.c.bf16 %v90_v38, %v89_v37  ;;  %v1905_v40 = vld [vmem:[%s2724_s3 + $0x38] sm:$0xff]   ;;  %v2208_v41 = vld [vmem:[%s2725_s2] ss:$0 sm:$0xff]  ;;  %v1907_v53 = vld [vmem:[%s2726_s5 + $0x8] sm:$0xff]  }
  0x1a   :  { %1715 = vmatprep.mubr.msk.bf16.mxu1 %vm138_vm0, %v113_v51  ;;  %1742 = vmatpush3.bf16.msra.mxu1 %v1901_v54  ;;  %v1906_v51 = vld [vmem:[%s2726_s5] sm:$0xff]   ;;  %v1909_v8 = vld [vmem:[%s2726_s5 + $0x18] sm:$0xff]   ;;  %v1911_v38 = vld [vmem:[%s2726_s5 + $0x28] sm:$0xff]  }
  0x1b   :  { %1743 = vmatprep.subr.bf16.mxu1 %v1902_v63  ;;  %1815 = vmatprep.subr.bf16.mxu0 %v1906_v51  ;;  %v1910_v23 = vld [vmem:[%s2726_s5 + $0x20] sm:$0xff]  }
  0x1c   :  { %1816 = vmatpush3.bf16.msra.mxu0 %v1906_v51 }
  0x1d   :  { %1817 = vmatprep.subr.bf16.mxu0 %v1907_v53 }
  0x1e   :  { %1684 = vmatmul.mubr.msk.bf16.gmra.mrb[12].mxu0 %vm138_vm0, %v98_v46  ;;  %1744 = vmatpush3.bf16.msra.mxu1 %v1902_v63 }
  0x1f   :  { %1687 = vmatprep.mubr.msk.bf16.mxu0 %vm138_vm0, %v99_v48  ;;  %1745 = vmatprep.subr.bf16.mxu1 %v1903_v4 }
  0x20   :  { %1818 = vmatpush3.bf16.msra.mxu0 %v1907_v53 }
  0x21   :  { %1716 = vmatmul.mubr.msk.bf16.gmra.mrb[12].mxu1 %vm138_vm0, %v114_v0 }
  0x22   :  { %1719 = vmatprep.mubr.msk.bf16.mxu1 %vm138_vm0, %v115_v1  ;;  %1746 = vmatpush3.bf16.msra.mxu1 %v1903_v4 }
  0x23   :  { %1747 = vmatprep.subr.bf16.mxu1 %v1904_v13 }
  0x26   :  { %1688 = vmatmul.mubr.msk.bf16.gmra.mrb[16].mxu0 %vm138_vm0, %v100_v59  ;;  %1748 = vmatpush3.bf16.msra.mxu1 %v1904_v13  ;;  %v1908_v59 = vld [vmem:[%s2726_s5 + $0x10] sm:$0xff]  }
  0x27   :  { %1691 = vmatprep.mubr.msk.bf16.mxu0 %vm138_vm0, %v101_v62  ;;  %1749 = vmatprep.subr.bf16.mxu1 %v1905_v40 }
  0x28   :  { %1819 = vmatprep.subr.bf16.mxu0 %v1908_v59 }
  0x29   :  { %1720 = vmatmul.mubr.msk.bf16.gmra.mrb[16].mxu1 %vm138_vm0, %v116_v14  ;;  %1820 = vmatpush3.bf16.msra.mxu0 %v1908_v59 }
  0x2a   :  { %1723 = vmatprep.mubr.msk.bf16.mxu1 %vm138_vm0, %v117_v15  ;;  %1750 = vmatpush3.bf16.msra.mxu1 %v1905_v40 }
  0x2b   :  { %1821 = vmatprep.subr.bf16.mxu0 %v1909_v8 }
  0x2d   :  { %1822 = vmatpush3.bf16.msra.mxu0 %v1909_v8 }
  0x2e   :  { %1692 = vmatmul.mubr.msk.bf16.gmra.mrb[20].mxu0 %vm138_vm0, %v102_v9  ;;  %1823 = vmatprep.subr.bf16.mxu0 %v1910_v23 }
  0x2f   :  { %1695 = vmatprep.mubr.msk.bf16.mxu0 %vm138_vm0, %v103_v12 }
  0x31   :  { %1724 = vmatmul.mubr.msk.bf16.gmra.mrb[20].mxu1 %vm138_vm0, %v118_v26  ;;  %1824 = vmatpush3.bf16.msra.mxu0 %v1910_v23 }
  0x32   :  { %1727 = vmatprep.mubr.msk.bf16.mxu1 %vm138_vm0, %v119_v27  ;;  %1825 = vmatprep.subr.bf16.mxu0 %v1911_v38 }
  0x35   :  { %1826 = vmatpush3.bf16.msra.mxu0 %v1911_v38 }
  0x36   :  { %1696 = vmatmul.mubr.msk.bf16.gmra.mrb[24].mxu0 %vm138_vm0, %v104_v22 }
  0x37   :  { %1699 = vmatprep.mubr.msk.bf16.mxu0 %vm138_vm0, %v105_v25 }
  0x39   :  { %1728 = vmatmul.mubr.msk.bf16.gmra.mrb[24].mxu1 %vm138_vm0, %v120_v35 }
  0x3a   :  { %1731 = vmatprep.mubr.msk.bf16.mxu1 %vm138_vm0, %v121_v36 }
  0x3e   :  { %1700 = vmatmul.mubr.msk.bf16.gmra.mrb[28].mxu0 %vm138_vm0, %v106_v32 }
  0x41   :  { %1732 = vmatmul.mubr.msk.bf16.gmra.mrb[28].mxu1 %vm138_vm0, %v122_v39 }
  0xd9   :  { %v1673_v42 = vpop.f32.mrb[0].mxu0 }
  0xda   :  { %v278_v43 = vadd.f32 %v1673_v42, %v2208_v41  ;;  %v269_v44 = vpop.f32.mrb[1].mxu0 }
  0xdb   :  { %v270_v45 = vadd.f32 %v2208_v41, %v269_v44  ;;  %v1674_v46 = vpop.f32.mrb[2].mxu0 }
  0xdc   :  { %v281_v47 = vadd.f32 %v1674_v46, %v2208_v41  ;;  %v272_v48 = vpop.f32.mrb[3].mxu0  ;;  %v526_v49 = vmax.f32 %v278_v43, 0.0  ;;  %v1705_v0 = vpop.f32.mrb[0].mxu1 }
  0xdd   :  { %v273_v50 = vadd.f32 %v2208_v41, %v272_v48  ;;  %v524_v54 = vmax.f32 %v270_v45, 0.0  ;;  %v406_v3 = vadd.f32 %v1705_v0, %v2208_v41  ;;  %v397_v4 = vpop.f32.mrb[1].mxu1 }
  0xde   :  { %v527_v52 = vmax.f32 %v281_v47, 0.0  ;;  %v398_v6 = vadd.f32 %v2208_v41, %v397_v4  ;;  %v1706_v7 = vpop.f32.mrb[2].mxu1 }
  0xdf   :  { %v525_v55 = vmax.f32 %v273_v50, 0.0  ;;  %v558_v11 = vmax.f32 %v406_v3, 0.0  ;;  %v409_v12 = vadd.f32 %v1706_v7, %v2208_v41  ;;  %v400_v13 = vpop.f32.mrb[3].mxu1 }
  0xe0   :  { %v589_v56 = vpack.c.bf16 %v527_v52, %v526_v49  ;;  %v556_v16 = vmax.f32 %v398_v6, 0.0  ;;  %v401_v17 = vadd.f32 %v2208_v41, %v400_v13 }
  0xe1   :  { %v588_v57 = vpack.c.bf16 %v525_v55, %v524_v54  ;;  %v1677_v58 = vpop.f32.mrb[4].mxu0  ;;  %v559_v19 = vmax.f32 %v409_v12, 0.0  ;;  %v1912_v54 = vld [vmem:[%s2726_s5 + $0x30] sm:$0xff]  }
  0xe2   :  { %v294_v60 = vadd.f32 %v1677_v58, %v2208_v41  ;;  %v285_v61 = vpop.f32.mrb[5].mxu0  ;;  %v557_v22 = vmax.f32 %v401_v17, 0.0  ;;  %1827 = vmatprep.subr.bf16.mxu0 %v1912_v54 }
  0xe3   :  { %v286_v62 = vadd.f32 %v2208_v41, %v285_v61  ;;  %v1678_v63 = vpop.f32.mrb[6].mxu0  ;;  %1751 = vmatprep.mubr.bf16.mxu1 %v588_v57  ;;  %v2238_v26 = vpack.c.bf16 %v559_v19, %v558_v11  ;;  %1828 = vmatpush3.bf16.msra.mxu0 %v1912_v54 }
  0xe4   :  { %v297_v1 = vadd.f32 %v1678_v63, %v2208_v41  ;;  %v288_v2 = vpop.f32.mrb[7].mxu0  ;;  %1752 = vmatmul.mubr.bf16.vlgmr.msra.gmra.mrb[32].mxu1 %v589_v56  ;;  %v530_v9 = vmax.f32 %v294_v60, 0.0  ;;  %v2241_v29 = vpack.c.bf16 %v557_v22, %v556_v16  ;;  %v1709_v30 = vpop.f32.mrb[4].mxu1 }
  0xe5   :  { %v289_v5 = vadd.f32 %v2208_v41, %v288_v2  ;;  %v528_v14 = vmax.f32 %v286_v62, 0.0  ;;  %v422_v33 = vadd.f32 %v1709_v30, %v2208_v41  ;;  %v413_v34 = vpop.f32.mrb[5].mxu1 }
  0xe6   :  { %v531_v10 = vmax.f32 %v297_v1, 0.0  ;;  %v414_v36 = vadd.f32 %v2208_v41, %v413_v34  ;;  %v1710_v37 = vpop.f32.mrb[6].mxu1 }
  0xe7   :  { %v529_v15 = vmax.f32 %v289_v5, 0.0  ;;  %v562_v42 = vmax.f32 %v422_v33, 0.0  ;;  %v425_v43 = vadd.f32 %v1710_v37, %v2208_v41  ;;  %v416_v44 = vpop.f32.mrb[7].mxu1 }
  0xe8   :  { %v591_v18 = vpack.c.bf16 %v531_v10, %v530_v9  ;;  %v560_v47 = vmax.f32 %v414_v36, 0.0  ;;  %v417_v48 = vadd.f32 %v2208_v41, %v416_v44 }
  0xe9   :  { %v590_v20 = vpack.c.bf16 %v529_v15, %v528_v14  ;;  %v1681_v21 = vpop.f32.mrb[8].mxu0  ;;  %v563_v50 = vmax.f32 %v425_v43, 0.0 }
  0xea   :  { %v310_v24 = vadd.f32 %v1681_v21, %v2208_v41  ;;  %v301_v25 = vpop.f32.mrb[9].mxu0  ;;  %v561_v53 = vmax.f32 %v417_v48, 0.0 }
  0xeb   :  { %v302_v27 = vadd.f32 %v2208_v41, %v301_v25  ;;  %v1682_v28 = vpop.f32.mrb[10].mxu0  ;;  %1755 = vmatprep.mubr.bf16.mxu1 %v590_v20  ;;  %v2256_v57 = vpack.c.bf16 %v563_v50, %v562_v42 }
  0xec   :  { %v313_v31 = vadd.f32 %v1682_v28, %v2208_v41  ;;  %v304_v32 = vpop.f32.mrb[11].mxu0  ;;  %1756 = vmatmul.mubr.bf16.gmra.mrb[36].mxu1 %v591_v18  ;;  %v534_v39 = vmax.f32 %v310_v24, 0.0  ;;  %v2259_v60 = vpack.c.bf16 %v561_v53, %v560_v47  ;;  %v1713_v61 = vpop.f32.mrb[8].mxu1 }
  0xed   :  { %v305_v35 = vadd.f32 %v2208_v41, %v304_v32  ;;  %v532_v45 = vmax.f32 %v302_v27, 0.0  ;;  %v438_v0 = vadd.f32 %v1713_v61, %v2208_v41  ;;  %v429_v1 = vpop.f32.mrb[9].mxu1 }
  0xee   :  { %v535_v40 = vmax.f32 %v313_v31, 0.0  ;;  %v430_v3 = vadd.f32 %v2208_v41, %v429_v1  ;;  %v1714_v4 = vpop.f32.mrb[10].mxu1 }
  0xef   :  { %v533_v46 = vmax.f32 %v305_v35, 0.0  ;;  %v566_v7 = vmax.f32 %v438_v0, 0.0  ;;  %v441_v8 = vadd.f32 %v1714_v4, %v2208_v41  ;;  %v432_v9 = vpop.f32.mrb[11].mxu1 }
  0xf0   :  { %v593_v49 = vpack.c.bf16 %v535_v40, %v534_v39  ;;  %v564_v12 = vmax.f32 %v430_v3, 0.0  ;;  %v433_v13 = vadd.f32 %v2208_v41, %v432_v9 }
  0xf1   :  { %v592_v51 = vpack.c.bf16 %v533_v46, %v532_v45  ;;  %v1685_v52 = vpop.f32.mrb[12].mxu0  ;;  %v567_v15 = vmax.f32 %v441_v8, 0.0 }
  0xf2   :  { %v326_v55 = vadd.f32 %v1685_v52, %v2208_v41  ;;  %v317_v56 = vpop.f32.mrb[13].mxu0  ;;  %v565_v18 = vmax.f32 %v433_v13, 0.0 }
  0xf3   :  { %v318_v58 = vadd.f32 %v2208_v41, %v317_v56  ;;  %v1686_v59 = vpop.f32.mrb[14].mxu0  ;;  %1759 = vmatprep.mubr.bf16.mxu1 %v592_v51  ;;  %v2268_v21 = vpack.c.bf16 %v567_v15, %v566_v7 }
  0xf4   :  { %v329_v62 = vadd.f32 %v1686_v59, %v2208_v41  ;;  %v320_v63 = vpop.f32.mrb[15].mxu0  ;;  %1760 = vmatmul.mubr.bf16.gmra.mrb[40].mxu1 %v593_v49  ;;  %v538_v5 = vmax.f32 %v326_v55, 0.0  ;;  %v2271_v24 = vpack.c.bf16 %v565_v18, %v564_v12  ;;  %v1717_v25 = vpop.f32.mrb[12].mxu1 }
  0xf5   :  { %v321_v2 = vadd.f32 %v2208_v41, %v320_v63  ;;  %v536_v10 = vmax.f32 %v318_v58, 0.0  ;;  %v454_v30 = vadd.f32 %v1717_v25, %v2208_v41  ;;  %v445_v31 = vpop.f32.mrb[13].mxu1 }
  0xf6   :  { %v539_v6 = vmax.f32 %v329_v62, 0.0  ;;  %v446_v33 = vadd.f32 %v2208_v41, %v445_v31  ;;  %v1718_v34 = vpop.f32.mrb[14].mxu1 }
  0xf7   :  { %v537_v11 = vmax.f32 %v321_v2, 0.0  ;;  %v570_v37 = vmax.f32 %v454_v30, 0.0  ;;  %v457_v38 = vadd.f32 %v1718_v34, %v2208_v41  ;;  %v448_v39 = vpop.f32.mrb[15].mxu1 }
  0xf8   :  { %v595_v14 = vpack.c.bf16 %v539_v6, %v538_v5  ;;  %v568_v43 = vmax.f32 %v446_v33, 0.0  ;;  %v449_v44 = vadd.f32 %v2208_v41, %v448_v39 }
  0xf9   :  { %v594_v16 = vpack.c.bf16 %v537_v11, %v536_v10  ;;  %v1689_v17 = vpop.f32.mrb[16].mxu0  ;;  %v571_v46 = vmax.f32 %v457_v38, 0.0 }
  0xfa   :  { %v342_v19 = vadd.f32 %v1689_v17, %v2208_v41  ;;  %v333_v20 = vpop.f32.mrb[17].mxu0  ;;  %v569_v49 = vmax.f32 %v449_v44, 0.0 }
  0xfb   :  { %v334_v22 = vadd.f32 %v2208_v41, %v333_v20  ;;  %v1690_v23 = vpop.f32.mrb[18].mxu0  ;;  %1763 = vmatprep.mubr.bf16.mxu1 %v594_v16  ;;  %v2280_v52 = vpack.c.bf16 %v571_v46, %v570_v37 }
  0xfc   :  { %v345_v27 = vadd.f32 %v1690_v23, %v2208_v41  ;;  %v336_v28 = vpop.f32.mrb[19].mxu0  ;;  %1764 = vmatmul.mubr.bf16.gmra.mrb[44].mxu1 %v595_v14  ;;  %v542_v35 = vmax.f32 %v342_v19, 0.0  ;;  %v2283_v55 = vpack.c.bf16 %v569_v49, %v568_v43  ;;  %v1721_v56 = vpop.f32.mrb[16].mxu1 }
  0xfd   :  { %v337_v32 = vadd.f32 %v2208_v41, %v336_v28  ;;  %v540_v40 = vmax.f32 %v334_v22, 0.0  ;;  %v470_v61 = vadd.f32 %v1721_v56, %v2208_v41  ;;  %v461_v62 = vpop.f32.mrb[17].mxu1 }
  0xfe   :  { %v543_v36 = vmax.f32 %v345_v27, 0.0  ;;  %v462_v0 = vadd.f32 %v2208_v41, %v461_v62  ;;  %v1722_v1 = vpop.f32.mrb[18].mxu1 }
  0xff   :  { %v541_v42 = vmax.f32 %v337_v32, 0.0  ;;  %v574_v4 = vmax.f32 %v470_v61, 0.0  ;;  %v473_v5 = vadd.f32 %v1722_v1, %v2208_v41  ;;  %v464_v6 = vpop.f32.mrb[19].mxu1 }
 0x100   :  { %v597_v45 = vpack.c.bf16 %v543_v36, %v542_v35  ;;  %v572_v9 = vmax.f32 %v462_v0, 0.0  ;;  %v465_v10 = vadd.f32 %v2208_v41, %v464_v6 }
 0x101   :  { %v596_v47 = vpack.c.bf16 %v541_v42, %v540_v40  ;;  %v1693_v48 = vpop.f32.mrb[20].mxu0  ;;  %v575_v12 = vmax.f32 %v473_v5, 0.0 }
 0x102   :  { %v358_v50 = vadd.f32 %v1693_v48, %v2208_v41  ;;  %v349_v51 = vpop.f32.mrb[21].mxu0  ;;  %v573_v15 = vmax.f32 %v465_v10, 0.0 }
 0x103   :  { %v350_v53 = vadd.f32 %v2208_v41, %v349_v51  ;;  %v1694_v54 = vpop.f32.mrb[22].mxu0  ;;  %1767 = vmatprep.mubr.bf16.mxu1 %v596_v47  ;;  %v2292_v18 = vpack.c.bf16 %v575_v12, %v574_v4 }
 0x104   :  { %v361_v58 = vadd.f32 %v1694_v54, %v2208_v41  ;;  %v352_v59 = vpop.f32.mrb[23].mxu0  ;;  %1768 = vmatmul.mubr.bf16.gmra.mrb[48].mxu1 %v597_v45  ;;  %v546_v2 = vmax.f32 %v358_v50, 0.0  ;;  %v2295_v22 = vpack.c.bf16 %v573_v15, %v572_v9  ;;  %v1725_v23 = vpop.f32.mrb[20].mxu1 }
 0x105   :  { %v353_v63 = vadd.f32 %v2208_v41, %v352_v59  ;;  %v544_v7 = vmax.f32 %v350_v53, 0.0  ;;  %v486_v28 = vadd.f32 %v1725_v23, %v2208_v41  ;;  %v477_v30 = vpop.f32.mrb[21].mxu1 }
 0x106   :  { %v547_v3 = vmax.f32 %v361_v58, 0.0  ;;  %v478_v32 = vadd.f32 %v2208_v41, %v477_v30  ;;  %v1726_v33 = vpop.f32.mrb[22].mxu1 }
 0x107   :  { %v545_v8 = vmax.f32 %v353_v63, 0.0  ;;  %v578_v36 = vmax.f32 %v486_v28, 0.0  ;;  %v489_v37 = vadd.f32 %v1726_v33, %v2208_v41  ;;  %v480_v38 = vpop.f32.mrb[23].mxu1 }
 0x108   :  { %v599_v11 = vpack.c.bf16 %v547_v3, %v546_v2  ;;  %v576_v42 = vmax.f32 %v478_v32, 0.0  ;;  %v481_v43 = vadd.f32 %v2208_v41, %v480_v38 }
 0x109   :  { %v598_v13 = vpack.c.bf16 %v545_v8, %v544_v7  ;;  %v1697_v14 = vpop.f32.mrb[24].mxu0  ;;  %v579_v45 = vmax.f32 %v489_v37, 0.0 }
 0x10a   :  { %v374_v16 = vadd.f32 %v1697_v14, %v2208_v41  ;;  %v365_v17 = vpop.f32.mrb[25].mxu0  ;;  %v577_v48 = vmax.f32 %v481_v43, 0.0 }
 0x10b   :  { %v366_v19 = vadd.f32 %v2208_v41, %v365_v17  ;;  %v1698_v20 = vpop.f32.mrb[26].mxu0  ;;  %1771 = vmatprep.mubr.bf16.mxu1 %v598_v13  ;;  %v615_v51 = vpack.c.bf16 %v579_v45, %v578_v36 }
 0x10c   :  { %v377_v25 = vadd.f32 %v1698_v20, %v2208_v41  ;;  %v368_v27 = vpop.f32.mrb[27].mxu0  ;;  %1772 = vmatmul.mubr.bf16.gmra.mrb[52].mxu1 %v599_v11  ;;  %v550_v34 = vmax.f32 %v374_v16, 0.0  ;;  %v614_v56 = vpack.c.bf16 %v577_v48, %v576_v42  ;;  %v1729_v58 = vpop.f32.mrb[24].mxu1 }
 0x10d   :  { %v369_v31 = vadd.f32 %v2208_v41, %v368_v27  ;;  %v548_v39 = vmax.f32 %v366_v19, 0.0  ;;  %v502_v62 = vadd.f32 %v1729_v58, %v2208_v41  ;;  %v493_v63 = vpop.f32.mrb[25].mxu1 }
 0x10e   :  { %v551_v35 = vmax.f32 %v377_v25, 0.0  ;;  %v494_v1 = vadd.f32 %v2208_v41, %v493_v63  ;;  %v1730_v2 = vpop.f32.mrb[26].mxu1 }
 0x10f   :  { %v549_v40 = vmax.f32 %v369_v31, 0.0  ;;  %v582_v5 = vmax.f32 %v502_v62, 0.0  ;;  %v505_v6 = vadd.f32 %v1730_v2, %v2208_v41  ;;  %v496_v7 = vpop.f32.mrb[27].mxu1 }
 0x110   :  { %v601_v44 = vpack.c.bf16 %v551_v35, %v550_v34  ;;  %v580_v10 = vmax.f32 %v494_v1, 0.0  ;;  %v497_v11 = vadd.f32 %v2208_v41, %v496_v7 }
 0x111   :  { %v600_v46 = vpack.c.bf16 %v549_v40, %v548_v39  ;;  %v1701_v47 = vpop.f32.mrb[28].mxu0  ;;  %v583_v13 = vmax.f32 %v505_v6, 0.0 }
 0x112   :  { %v390_v49 = vadd.f32 %v1701_v47, %v2208_v41  ;;  %v381_v50 = vpop.f32.mrb[29].mxu0  ;;  %v581_v15 = vmax.f32 %v497_v11, 0.0 }
 0x113   :  { %v382_v53 = vadd.f32 %v2208_v41, %v381_v50  ;;  %v1702_v54 = vpop.f32.mrb[30].mxu0  ;;  %1775 = vmatprep.mubr.bf16.mxu1 %v600_v46  ;;  %v617_v16 = vpack.c.bf16 %v583_v13, %v582_v5 }
 0x114   :  { %v393_v59 = vadd.f32 %v1702_v54, %v2208_v41  ;;  %v384_v61 = vpop.f32.mrb[31].mxu0  ;;  %1776 = vmatmul.mubr.bf16.gmra.mrb[56].mxu1 %v601_v44  ;;  %v554_v3 = vmax.f32 %v390_v49, 0.0  ;;  %v616_v17 = vpack.c.bf16 %v581_v15, %v580_v10  ;;  %v1733_v19 = vpop.f32.mrb[28].mxu1 }
 0x115   :  { %v385_v0 = vadd.f32 %v2208_v41, %v384_v61  ;;  %v552_v8 = vmax.f32 %v382_v53, 0.0  ;;  %v518_v20 = vadd.f32 %v1733_v19, %v2208_v41  ;;  %v509_v23 = vpop.f32.mrb[29].mxu1 }
 0x116   :  { %v555_v4 = vmax.f32 %v393_v59, 0.0  ;;  %v510_v25 = vadd.f32 %v2208_v41, %v509_v23  ;;  %v1734_v27 = vpop.f32.mrb[30].mxu1 }
 0x117   :  { %v553_v9 = vmax.f32 %v385_v0, 0.0  ;;  %v586_v28 = vmax.f32 %v518_v20, 0.0  ;;  %v521_v30 = vadd.f32 %v1734_v27, %v2208_v41  ;;  %v512_v31 = vpop.f32.mrb[31].mxu1 }
 0x118   :  { %v603_v12 = vpack.c.bf16 %v555_v4, %v554_v3  ;;  %v584_v32 = vmax.f32 %v510_v25, 0.0  ;;  %v513_v33 = vadd.f32 %v2208_v41, %v512_v31  ;;  %v1913_v41 = vld [vmem:[%s2726_s5 + $0x38] sm:$0xff]  }
 0x119   :  { %v602_v14 = vpack.c.bf16 %v553_v9, %v552_v8  ;;  %v587_v34 = vmax.f32 %v521_v30, 0.0  ;;  %1829 = vmatprep.subr.bf16.mxu0 %v1913_v41 }
 0x11a   :  { %v585_v35 = vmax.f32 %v513_v33, 0.0  ;;  %1830 = vmatpush3.bf16.msra.mxu0 %v1913_v41 }
 0x11b   :  { %1779 = vmatprep.mubr.bf16.mxu1 %v602_v14  ;;  %v619_v36 = vpack.c.bf16 %v587_v34, %v586_v28 }
 0x11c   :  { %1780 = vmatmul.mubr.bf16.gmra.mrb[60].mxu1 %v603_v12  ;;  %v618_v37 = vpack.c.bf16 %v585_v35, %v584_v32 }
 0x11d   :  { %1783 = vmatprep.mubr.bf16.mxu1 %v2241_v29 }
 0x124   :  { %1784 = vmatmul.mubr.bf16.gmra.mrb[64].mxu1 %v2238_v26  ;;  %v2331_v26 = vld [vmem:[%s2727_s4] ss:$0 sm:$0xff] }
 0x125   :  { %1787 = vmatprep.mubr.bf16.mxu1 %v2259_v60 }
 0x12c   :  { %1788 = vmatmul.mubr.bf16.gmra.mrb[68].mxu1 %v2256_v57 }
 0x12d   :  { %1791 = vmatprep.mubr.bf16.mxu1 %v2271_v24 }
 0x134   :  { %1792 = vmatmul.mubr.bf16.gmra.mrb[72].mxu1 %v2268_v21 }
 0x135   :  { %1795 = vmatprep.mubr.bf16.mxu1 %v2283_v55 }
 0x13c   :  { %1796 = vmatmul.mubr.bf16.gmra.mrb[76].mxu1 %v2280_v52 }
 0x13d   :  { %1799 = vmatprep.mubr.bf16.mxu1 %v2295_v22 }
 0x144   :  { %1800 = vmatmul.mubr.bf16.gmra.mrb[80].mxu1 %v2292_v18 }
 0x145   :  { %1803 = vmatprep.mubr.bf16.mxu1 %v614_v56 }
 0x14c   :  { %1804 = vmatmul.mubr.bf16.gmra.mrb[84].mxu1 %v615_v51 }
 0x14d   :  { %1807 = vmatprep.mubr.bf16.mxu1 %v616_v17 }
 0x154   :  { %1808 = vmatmul.mubr.bf16.gmra.mrb[88].mxu1 %v617_v16 }
 0x155   :  { %1811 = vmatprep.mubr.bf16.mxu1 %v618_v37 }
 0x15c   :  { %1812 = vmatmul.mubr.bf16.gmra.mrb[92].mxu1 %v619_v36 }
 0x1b7   :  { %v1753_v29 = vpop.f32.mrb[32].mxu1 }
 0x1b8   :  { %v734_v57 = vadd.f32 %v1753_v29, %v2331_v26  ;;  %v725_v60 = vpop.f32.mrb[33].mxu1 }
 0x1b9   :  { %v726_v21 = vadd.f32 %v2331_v26, %v725_v60  ;;  %v1754_v24 = vpop.f32.mrb[34].mxu1 }
 0x1ba   :  { %v737_v52 = vadd.f32 %v1754_v24, %v2331_v26  ;;  %v728_v55 = vpop.f32.mrb[35].mxu1  ;;  %v982_v22 = vmax.f32 %v734_v57, 0.0 }
 0x1bb   :  { %v729_v18 = vadd.f32 %v2331_v26, %v728_v55  ;;  %v980_v39 = vmax.f32 %v726_v21, 0.0 }
 0x1bc   :  { %v983_v38 = vmax.f32 %v737_v52, 0.0 }
 0x1bd   :  { %v981_v40 = vmax.f32 %v729_v18, 0.0 }
 0x1be   :  { %v1045_v42 = vpack.c.bf16 %v983_v38, %v982_v22 }
 0x1bf   :  { %v1044_v43 = vpack.c.bf16 %v981_v40, %v980_v39  ;;  %v1757_v44 = vpop.f32.mrb[36].mxu1 }
 0x1c0   :  { %v750_v45 = vadd.f32 %v1757_v44, %v2331_v26  ;;  %v741_v46 = vpop.f32.mrb[37].mxu1 }
 0x1c1   :  { %v742_v47 = vadd.f32 %v2331_v26, %v741_v46  ;;  %v1758_v48 = vpop.f32.mrb[38].mxu1  ;;  %1831 = vmatprep.mubr.bf16.mxu0 %v1044_v43 }
 0x1c2   :  { %v753_v49 = vadd.f32 %v1758_v48, %v2331_v26  ;;  %v744_v50 = vpop.f32.mrb[39].mxu1  ;;  %1832 = vmatmul.mubr.bf16.vlgmr.msra.gmra.mrb[32].mxu0 %v1045_v42  ;;  %v986_v53 = vmax.f32 %v750_v45, 0.0 }
 0x1c3   :  { %v745_v51 = vadd.f32 %v2331_v26, %v744_v50  ;;  %v984_v56 = vmax.f32 %v742_v47, 0.0 }
 0x1c4   :  { %v987_v54 = vmax.f32 %v753_v49, 0.0 }
 0x1c5   :  { %v985_v58 = vmax.f32 %v745_v51, 0.0 }
 0x1c6   :  { %v1047_v59 = vpack.c.bf16 %v987_v54, %v986_v53 }
 0x1c7   :  { %v1046_v61 = vpack.c.bf16 %v985_v58, %v984_v56  ;;  %v1761_v62 = vpop.f32.mrb[40].mxu1 }
 0x1c8   :  { %v766_v63 = vadd.f32 %v1761_v62, %v2331_v26  ;;  %v757_v0 = vpop.f32.mrb[41].mxu1 }
 0x1c9   :  { %v758_v1 = vadd.f32 %v2331_v26, %v757_v0  ;;  %v1762_v2 = vpop.f32.mrb[42].mxu1  ;;  %1835 = vmatprep.mubr.bf16.mxu0 %v1046_v61 }
 0x1ca   :  { %v769_v3 = vadd.f32 %v1762_v2, %v2331_v26  ;;  %v760_v4 = vpop.f32.mrb[43].mxu1  ;;  %1836 = vmatmul.mubr.bf16.gmra.mrb[36].mxu0 %v1047_v59  ;;  %v990_v6 = vmax.f32 %v766_v63, 0.0 }
 0x1cb   :  { %v761_v5 = vadd.f32 %v2331_v26, %v760_v4  ;;  %v988_v8 = vmax.f32 %v758_v1, 0.0 }
 0x1cc   :  { %v991_v7 = vmax.f32 %v769_v3, 0.0 }
 0x1cd   :  { %v989_v9 = vmax.f32 %v761_v5, 0.0 }
 0x1ce   :  { %v1049_v10 = vpack.c.bf16 %v991_v7, %v990_v6 }
 0x1cf   :  { %v1048_v11 = vpack.c.bf16 %v989_v9, %v988_v8  ;;  %v1765_v12 = vpop.f32.mrb[44].mxu1 }
 0x1d0   :  { %v782_v13 = vadd.f32 %v1765_v12, %v2331_v26  ;;  %v773_v14 = vpop.f32.mrb[45].mxu1 }
 0x1d1   :  { %v774_v15 = vadd.f32 %v2331_v26, %v773_v14  ;;  %v1766_v16 = vpop.f32.mrb[46].mxu1  ;;  %1839 = vmatprep.mubr.bf16.mxu0 %v1048_v11 }
 0x1d2   :  { %v785_v17 = vadd.f32 %v1766_v16, %v2331_v26  ;;  %v776_v19 = vpop.f32.mrb[47].mxu1  ;;  %1840 = vmatmul.mubr.bf16.gmra.mrb[40].mxu0 %v1049_v10  ;;  %v994_v23 = vmax.f32 %v782_v13, 0.0 }
 0x1d3   :  { %v777_v20 = vadd.f32 %v2331_v26, %v776_v19  ;;  %v992_v27 = vmax.f32 %v774_v15, 0.0 }
 0x1d4   :  { %v995_v25 = vmax.f32 %v785_v17, 0.0 }
 0x1d5   :  { %v993_v28 = vmax.f32 %v777_v20, 0.0 }
 0x1d6   :  { %v1051_v30 = vpack.c.bf16 %v995_v25, %v994_v23 }
 0x1d7   :  { %v1050_v31 = vpack.c.bf16 %v993_v28, %v992_v27  ;;  %v1769_v32 = vpop.f32.mrb[48].mxu1 }
 0x1d8   :  { %v798_v33 = vadd.f32 %v1769_v32, %v2331_v26  ;;  %v789_v34 = vpop.f32.mrb[49].mxu1 }
 0x1d9   :  { %v790_v35 = vadd.f32 %v2331_v26, %v789_v34  ;;  %v1770_v36 = vpop.f32.mrb[50].mxu1  ;;  %1843 = vmatprep.mubr.bf16.mxu0 %v1050_v31 }
 0x1da   :  { %v801_v37 = vadd.f32 %v1770_v36, %v2331_v26  ;;  %v792_v41 = vpop.f32.mrb[51].mxu1  ;;  %1844 = vmatmul.mubr.bf16.gmra.mrb[44].mxu0 %v1051_v30  ;;  %v998_v57 = vmax.f32 %v798_v33, 0.0 }
 0x1db   :  { %v793_v29 = vadd.f32 %v2331_v26, %v792_v41  ;;  %v996_v21 = vmax.f32 %v790_v35, 0.0 }
 0x1dc   :  { %v999_v60 = vmax.f32 %v801_v37, 0.0 }
 0x1dd   :  { %v997_v24 = vmax.f32 %v793_v29, 0.0 }
 0x1de   :  { %v1053_v52 = vpack.c.bf16 %v999_v60, %v998_v57 }
 0x1df   :  { %v1052_v55 = vpack.c.bf16 %v997_v24, %v996_v21  ;;  %v1773_v18 = vpop.f32.mrb[52].mxu1 }
 0x1e0   :  { %v814_v22 = vadd.f32 %v1773_v18, %v2331_v26  ;;  %v805_v38 = vpop.f32.mrb[53].mxu1 }
 0x1e1   :  { %v806_v39 = vadd.f32 %v2331_v26, %v805_v38  ;;  %v1774_v40 = vpop.f32.mrb[54].mxu1  ;;  %1847 = vmatprep.mubr.bf16.mxu0 %v1052_v55 }
 0x1e2   :  { %v817_v42 = vadd.f32 %v1774_v40, %v2331_v26  ;;  %v808_v43 = vpop.f32.mrb[55].mxu1  ;;  %1848 = vmatmul.mubr.bf16.gmra.mrb[48].mxu0 %v1053_v52  ;;  %v1002_v45 = vmax.f32 %v814_v22, 0.0 }
 0x1e3   :  { %v809_v44 = vadd.f32 %v2331_v26, %v808_v43  ;;  %v1000_v47 = vmax.f32 %v806_v39, 0.0 }
 0x1e4   :  { %v1003_v46 = vmax.f32 %v817_v42, 0.0 }
 0x1e5   :  { %v1001_v48 = vmax.f32 %v809_v44, 0.0 }
 0x1e6   :  { %v1055_v49 = vpack.c.bf16 %v1003_v46, %v1002_v45 }
 0x1e7   :  { %v1054_v50 = vpack.c.bf16 %v1001_v48, %v1000_v47  ;;  %v1777_v51 = vpop.f32.mrb[56].mxu1 }
 0x1e8   :  { %v830_v53 = vadd.f32 %v1777_v51, %v2331_v26  ;;  %v821_v54 = vpop.f32.mrb[57].mxu1 }
 0x1e9   :  { %v822_v56 = vadd.f32 %v2331_v26, %v821_v54  ;;  %v1778_v58 = vpop.f32.mrb[58].mxu1  ;;  %1851 = vmatprep.mubr.bf16.mxu0 %v1054_v50 }
 0x1ea   :  { %v833_v59 = vadd.f32 %v1778_v58, %v2331_v26  ;;  %v824_v61 = vpop.f32.mrb[59].mxu1  ;;  %1852 = vmatmul.mubr.bf16.gmra.mrb[52].mxu0 %v1055_v49  ;;  %v1006_v63 = vmax.f32 %v830_v53, 0.0 }
 0x1eb   :  { %v825_v62 = vadd.f32 %v2331_v26, %v824_v61  ;;  %v1004_v1 = vmax.f32 %v822_v56, 0.0 }
 0x1ec   :  { %v1007_v0 = vmax.f32 %v833_v59, 0.0 }
 0x1ed   :  { %v1005_v2 = vmax.f32 %v825_v62, 0.0 }
 0x1ee   :  { %v1057_v3 = vpack.c.bf16 %v1007_v0, %v1006_v63 }
 0x1ef   :  { %v1056_v4 = vpack.c.bf16 %v1005_v2, %v1004_v1  ;;  %v1781_v5 = vpop.f32.mrb[60].mxu1 }
 0x1f0   :  { %v846_v6 = vadd.f32 %v1781_v5, %v2331_v26  ;;  %v837_v7 = vpop.f32.mrb[61].mxu1 }
 0x1f1   :  { %v838_v8 = vadd.f32 %v2331_v26, %v837_v7  ;;  %v1782_v9 = vpop.f32.mrb[62].mxu1  ;;  %1855 = vmatprep.mubr.bf16.mxu0 %v1056_v4 }
 0x1f2   :  { %v849_v10 = vadd.f32 %v1782_v9, %v2331_v26  ;;  %v840_v11 = vpop.f32.mrb[63].mxu1  ;;  %1856 = vmatmul.mubr.bf16.gmra.mrb[56].mxu0 %v1057_v3  ;;  %v1010_v13 = vmax.f32 %v846_v6, 0.0 }
 0x1f3   :  { %v841_v12 = vadd.f32 %v2331_v26, %v840_v11  ;;  %v1008_v15 = vmax.f32 %v838_v8, 0.0 }
 0x1f4   :  { %v1011_v14 = vmax.f32 %v849_v10, 0.0 }
 0x1f5   :  { %v1009_v16 = vmax.f32 %v841_v12, 0.0 }
 0x1f6   :  { %v1059_v17 = vpack.c.bf16 %v1011_v14, %v1010_v13 }
 0x1f7   :  { %v1058_v19 = vpack.c.bf16 %v1009_v16, %v1008_v15  ;;  %v1785_v20 = vpop.f32.mrb[64].mxu1 }
 0x1f8   :  { %v862_v23 = vadd.f32 %v1785_v20, %v2331_v26  ;;  %v853_v25 = vpop.f32.mrb[65].mxu1 }
 0x1f9   :  { %v854_v27 = vadd.f32 %v2331_v26, %v853_v25  ;;  %v1786_v28 = vpop.f32.mrb[66].mxu1  ;;  %1859 = vmatprep.mubr.bf16.mxu0 %v1058_v19 }
 0x1fa   :  { %v865_v30 = vadd.f32 %v1786_v28, %v2331_v26  ;;  %v856_v31 = vpop.f32.mrb[67].mxu1  ;;  %1860 = vmatmul.mubr.bf16.gmra.mrb[60].mxu0 %v1059_v17  ;;  %v1014_v33 = vmax.f32 %v862_v23, 0.0 }
 0x1fb   :  { %v857_v32 = vadd.f32 %v2331_v26, %v856_v31  ;;  %v1012_v35 = vmax.f32 %v854_v27, 0.0 }
 0x1fc   :  { %v1015_v34 = vmax.f32 %v865_v30, 0.0 }
 0x1fd   :  { %v1013_v36 = vmax.f32 %v857_v32, 0.0 }
 0x1fe   :  { %v1061_v37 = vpack.c.bf16 %v1015_v34, %v1014_v33 }
 0x1ff   :  { %v1060_v41 = vpack.c.bf16 %v1013_v36, %v1012_v35  ;;  %v1789_v29 = vpop.f32.mrb[68].mxu1 }
 0x200   :  { %v878_v57 = vadd.f32 %v1789_v29, %v2331_v26  ;;  %v869_v60 = vpop.f32.mrb[69].mxu1 }
 0x201   :  { %v870_v21 = vadd.f32 %v2331_v26, %v869_v60  ;;  %v1790_v24 = vpop.f32.mrb[70].mxu1  ;;  %1863 = vmatprep.mubr.bf16.mxu0 %v1060_v41 }
 0x202   :  { %v881_v52 = vadd.f32 %v1790_v24, %v2331_v26  ;;  %v872_v55 = vpop.f32.mrb[71].mxu1  ;;  %1864 = vmatmul.mubr.bf16.gmra.mrb[64].mxu0 %v1061_v37  ;;  %v1018_v22 = vmax.f32 %v878_v57, 0.0 }
 0x203   :  { %v873_v18 = vadd.f32 %v2331_v26, %v872_v55  ;;  %v1016_v39 = vmax.f32 %v870_v21, 0.0 }
 0x204   :  { %v1019_v38 = vmax.f32 %v881_v52, 0.0 }
 0x205   :  { %v1017_v40 = vmax.f32 %v873_v18, 0.0 }
 0x206   :  { %v1063_v42 = vpack.c.bf16 %v1019_v38, %v1018_v22 }
 0x207   :  { %v1062_v43 = vpack.c.bf16 %v1017_v40, %v1016_v39  ;;  %v1793_v44 = vpop.f32.mrb[72].mxu1 }
 0x208   :  { %v894_v45 = vadd.f32 %v1793_v44, %v2331_v26  ;;  %v885_v46 = vpop.f32.mrb[73].mxu1 }
 0x209   :  { %v886_v47 = vadd.f32 %v2331_v26, %v885_v46  ;;  %v1794_v48 = vpop.f32.mrb[74].mxu1  ;;  %1867 = vmatprep.mubr.bf16.mxu0 %v1062_v43 }
 0x20a   :  { %v897_v49 = vadd.f32 %v1794_v48, %v2331_v26  ;;  %v888_v50 = vpop.f32.mrb[75].mxu1  ;;  %1868 = vmatmul.mubr.bf16.gmra.mrb[68].mxu0 %v1063_v42  ;;  %v1022_v53 = vmax.f32 %v894_v45, 0.0 }
 0x20b   :  { %v889_v51 = vadd.f32 %v2331_v26, %v888_v50  ;;  %v1020_v56 = vmax.f32 %v886_v47, 0.0 }
 0x20c   :  { %v1023_v54 = vmax.f32 %v897_v49, 0.0 }
 0x20d   :  { %v1021_v58 = vmax.f32 %v889_v51, 0.0 }
 0x20e   :  { %v1065_v59 = vpack.c.bf16 %v1023_v54, %v1022_v53 }
 0x20f   :  { %v1064_v61 = vpack.c.bf16 %v1021_v58, %v1020_v56  ;;  %v1797_v62 = vpop.f32.mrb[76].mxu1 }
 0x210   :  { %v910_v63 = vadd.f32 %v1797_v62, %v2331_v26  ;;  %v901_v0 = vpop.f32.mrb[77].mxu1 }
 0x211   :  { %v902_v1 = vadd.f32 %v2331_v26, %v901_v0  ;;  %v1798_v2 = vpop.f32.mrb[78].mxu1  ;;  %1871 = vmatprep.mubr.bf16.mxu0 %v1064_v61 }
 0x212   :  { %v913_v3 = vadd.f32 %v1798_v2, %v2331_v26  ;;  %v904_v4 = vpop.f32.mrb[79].mxu1  ;;  %1872 = vmatmul.mubr.bf16.gmra.mrb[72].mxu0 %v1065_v59  ;;  %v1026_v6 = vmax.f32 %v910_v63, 0.0 }
 0x213   :  { %v905_v5 = vadd.f32 %v2331_v26, %v904_v4  ;;  %v1024_v8 = vmax.f32 %v902_v1, 0.0 }
 0x214   :  { %v1027_v7 = vmax.f32 %v913_v3, 0.0 }
 0x215   :  { %v1025_v9 = vmax.f32 %v905_v5, 0.0  ;;  %v2400_v5 = vld [vmem:[%s2728_s6] ss:$0 sm:$0xff] }
 0x216   :  { %v1067_v10 = vpack.c.bf16 %v1027_v7, %v1026_v6 }
 0x217   :  { %v1066_v11 = vpack.c.bf16 %v1025_v9, %v1024_v8  ;;  %v1801_v12 = vpop.f32.mrb[80].mxu1 }
 0x218   :  { %v926_v13 = vadd.f32 %v1801_v12, %v2331_v26  ;;  %v917_v14 = vpop.f32.mrb[81].mxu1 }
 0x219   :  { %v918_v15 = vadd.f32 %v2331_v26, %v917_v14  ;;  %v1802_v16 = vpop.f32.mrb[82].mxu1  ;;  %1875 = vmatprep.mubr.bf16.mxu0 %v1066_v11 }
 0x21a   :  { %v929_v17 = vadd.f32 %v1802_v16, %v2331_v26  ;;  %v920_v19 = vpop.f32.mrb[83].mxu1  ;;  %1876 = vmatmul.mubr.bf16.gmra.mrb[76].mxu0 %v1067_v10  ;;  %v1030_v23 = vmax.f32 %v926_v13, 0.0 }
 0x21b   :  { %v921_v20 = vadd.f32 %v2331_v26, %v920_v19  ;;  %v1028_v27 = vmax.f32 %v918_v15, 0.0 }
 0x21c   :  { %v1031_v25 = vmax.f32 %v929_v17, 0.0 }
 0x21d   :  { %v1029_v28 = vmax.f32 %v921_v20, 0.0 }
 0x21e   :  { %v1069_v30 = vpack.c.bf16 %v1031_v25, %v1030_v23 }
 0x21f   :  { %v1068_v31 = vpack.c.bf16 %v1029_v28, %v1028_v27  ;;  %v1805_v32 = vpop.f32.mrb[84].mxu1 }
 0x220   :  { %v942_v33 = vadd.f32 %v1805_v32, %v2331_v26  ;;  %v933_v34 = vpop.f32.mrb[85].mxu1 }
 0x221   :  { %v934_v35 = vadd.f32 %v2331_v26, %v933_v34  ;;  %v1806_v36 = vpop.f32.mrb[86].mxu1  ;;  %1879 = vmatprep.mubr.bf16.mxu0 %v1068_v31 }
 0x222   :  { %v945_v37 = vadd.f32 %v1806_v36, %v2331_v26  ;;  %v936_v41 = vpop.f32.mrb[87].mxu1  ;;  %1880 = vmatmul.mubr.bf16.gmra.mrb[80].mxu0 %v1069_v30  ;;  %v1034_v57 = vmax.f32 %v942_v33, 0.0 }
 0x223   :  { %v937_v29 = vadd.f32 %v2331_v26, %v936_v41  ;;  %v1032_v21 = vmax.f32 %v934_v35, 0.0 }
 0x224   :  { %v1035_v60 = vmax.f32 %v945_v37, 0.0 }
 0x225   :  { %v1033_v24 = vmax.f32 %v937_v29, 0.0 }
 0x226   :  { %v1071_v52 = vpack.c.bf16 %v1035_v60, %v1034_v57 }
 0x227   :  { %v1070_v55 = vpack.c.bf16 %v1033_v24, %v1032_v21  ;;  %v1809_v18 = vpop.f32.mrb[88].mxu1 }
 0x228   :  { %v958_v22 = vadd.f32 %v1809_v18, %v2331_v26  ;;  %v949_v38 = vpop.f32.mrb[89].mxu1 }
 0x229   :  { %v950_v39 = vadd.f32 %v2331_v26, %v949_v38  ;;  %v1810_v40 = vpop.f32.mrb[90].mxu1  ;;  %1883 = vmatprep.mubr.bf16.mxu0 %v1070_v55 }
 0x22a   :  { %v961_v42 = vadd.f32 %v1810_v40, %v2331_v26  ;;  %v952_v43 = vpop.f32.mrb[91].mxu1  ;;  %1884 = vmatmul.mubr.bf16.gmra.mrb[84].mxu0 %v1071_v52  ;;  %v1038_v45 = vmax.f32 %v958_v22, 0.0 }
 0x22b   :  { %v953_v44 = vadd.f32 %v2331_v26, %v952_v43  ;;  %v1036_v47 = vmax.f32 %v950_v39, 0.0 }
 0x22c   :  { %v1039_v46 = vmax.f32 %v961_v42, 0.0 }
 0x22d   :  { %v1037_v48 = vmax.f32 %v953_v44, 0.0 }
 0x22e   :  { %v1073_v49 = vpack.c.bf16 %v1039_v46, %v1038_v45 }
 0x22f   :  { %v1072_v50 = vpack.c.bf16 %v1037_v48, %v1036_v47  ;;  %v1813_v51 = vpop.f32.mrb[92].mxu1 }
 0x230   :  { %v974_v53 = vadd.f32 %v1813_v51, %v2331_v26  ;;  %v965_v54 = vpop.f32.mrb[93].mxu1 }
 0x231   :  { %v966_v56 = vadd.f32 %v2331_v26, %v965_v54  ;;  %v1814_v58 = vpop.f32.mrb[94].mxu1  ;;  %1887 = vmatprep.mubr.bf16.mxu0 %v1072_v50 }
 0x232   :  { %v977_v59 = vadd.f32 %v1814_v58, %v2331_v26  ;;  %v968_v61 = vpop.f32.mrb[95].mxu1  ;;  %1888 = vmatmul.mubr.bf16.gmra.mrb[88].mxu0 %v1073_v49  ;;  %v1042_v63 = vmax.f32 %v974_v53, 0.0 }
 0x233   :  { %v969_v62 = vadd.f32 %v2331_v26, %v968_v61  ;;  %v1040_v1 = vmax.f32 %v966_v56, 0.0 }
 0x234   :  { %v1043_v0 = vmax.f32 %v977_v59, 0.0 }
 0x235   :  { %v1041_v2 = vmax.f32 %v969_v62, 0.0 }
 0x236   :  { %v1075_v3 = vpack.c.bf16 %v1043_v0, %v1042_v63 }
 0x237   :  { %v1074_v4 = vpack.c.bf16 %v1041_v2, %v1040_v1 }
 0x239   :  { %1891 = vmatprep.mubr.bf16.mxu0 %v1074_v4 }
 0x23a   :  { %1892 = vmatmul.mubr.bf16.gmra.mrb[92].mxu0 %v1075_v3 }
 0x295   :  { %v1833_v6 = vpop.f32.mrb[32].mxu0 }
 0x296   :  { %v1190_v7 = vadd.f32 %v1833_v6, %v2400_v5  ;;  %v1181_v8 = vpop.f32.mrb[33].mxu0 }
 0x297   :  { %v1182_v9 = vadd.f32 %v2400_v5, %v1181_v8  ;;  %v1834_v26 = vpop.f32.mrb[34].mxu0 }
 0x298   :  { %1438 = vst.msk [vmem:[%s2729_s7 + $0x10] sm:$0xff] %vm138_vm0, %v1190_v7  ;;  %v1193_v10 = vadd.f32 %v1834_v26, %v2400_v5  ;;  %v1184_v11 = vpop.f32.mrb[35].mxu0 }
 0x299   :  { %1436 = vst.msk [vmem:[%s2729_s7] sm:$0xff] %vm138_vm0, %v1182_v9  ;;  %v1185_v12 = vadd.f32 %v2400_v5, %v1184_v11 }
 0x29a   :  { %1439 = vst.msk [vmem:[%s2729_s7 + $0x18] sm:$0xff] %vm138_vm0, %v1193_v10 }
 0x29b   :  { %1437 = vst.msk [vmem:[%s2729_s7 + $0x8] sm:$0xff] %vm138_vm0, %v1185_v12 }
 0x29d   :  { %v1837_v13 = vpop.f32.mrb[36].mxu0 }
 0x29e   :  { %v1206_v14 = vadd.f32 %v1837_v13, %v2400_v5  ;;  %v1197_v15 = vpop.f32.mrb[37].mxu0 }
 0x29f   :  { %v1198_v16 = vadd.f32 %v2400_v5, %v1197_v15  ;;  %v1838_v17 = vpop.f32.mrb[38].mxu0 }
 0x2a0   :  { %1442 = vst.msk [vmem:[%s2729_s7 + $0x30] sm:$0xff] %vm138_vm0, %v1206_v14  ;;  %v1209_v19 = vadd.f32 %v1838_v17, %v2400_v5  ;;  %v1200_v20 = vpop.f32.mrb[39].mxu0 }
 0x2a1   :  { %1440 = vst.msk [vmem:[%s2729_s7 + $0x20] sm:$0xff] %vm138_vm0, %v1198_v16  ;;  %v1201_v23 = vadd.f32 %v2400_v5, %v1200_v20 }
 0x2a2   :  { %1443 = vst.msk [vmem:[%s2729_s7 + $0x38] sm:$0xff] %vm138_vm0, %v1209_v19 }
 0x2a3   :  { %1441 = vst.msk [vmem:[%s2729_s7 + $0x28] sm:$0xff] %vm138_vm0, %v1201_v23 }
 0x2a5   :  { %v1841_v25 = vpop.f32.mrb[40].mxu0 }
 0x2a6   :  { %v1222_v27 = vadd.f32 %v1841_v25, %v2400_v5  ;;  %v1213_v28 = vpop.f32.mrb[41].mxu0 }
 0x2a7   :  { %v1214_v30 = vadd.f32 %v2400_v5, %v1213_v28  ;;  %v1842_v31 = vpop.f32.mrb[42].mxu0 }
 0x2a8   :  { %1446 = vst.msk [vmem:[%s2729_s7 + $0x50] sm:$0xff] %vm138_vm0, %v1222_v27  ;;  %v1225_v32 = vadd.f32 %v1842_v31, %v2400_v5  ;;  %v1216_v33 = vpop.f32.mrb[43].mxu0 }
 0x2a9   :  { %1444 = vst.msk [vmem:[%s2729_s7 + $0x40] sm:$0xff] %vm138_vm0, %v1214_v30  ;;  %v1217_v34 = vadd.f32 %v2400_v5, %v1216_v33 }
 0x2aa   :  { %1447 = vst.msk [vmem:[%s2729_s7 + $0x58] sm:$0xff] %vm138_vm0, %v1225_v32 }
 0x2ab   :  { %1445 = vst.msk [vmem:[%s2729_s7 + $0x48] sm:$0xff] %vm138_vm0, %v1217_v34 }
 0x2ad   :  { %v1845_v35 = vpop.f32.mrb[44].mxu0 }
 0x2ae   :  { %v1238_v36 = vadd.f32 %v1845_v35, %v2400_v5  ;;  %v1229_v37 = vpop.f32.mrb[45].mxu0 }
 0x2af   :  { %v1230_v41 = vadd.f32 %v2400_v5, %v1229_v37  ;;  %v1846_v29 = vpop.f32.mrb[46].mxu0 }
 0x2b0   :  { %1450 = vst.msk [vmem:[%s2729_s7 + $0x70] sm:$0xff] %vm138_vm0, %v1238_v36  ;;  %v1241_v57 = vadd.f32 %v1846_v29, %v2400_v5  ;;  %v1232_v60 = vpop.f32.mrb[47].mxu0 }
 0x2b1   :  { %1448 = vst.msk [vmem:[%s2729_s7 + $0x60] sm:$0xff] %vm138_vm0, %v1230_v41  ;;  %v1233_v21 = vadd.f32 %v2400_v5, %v1232_v60 }
 0x2b2   :  { %1451 = vst.msk [vmem:[%s2729_s7 + $0x78] sm:$0xff] %vm138_vm0, %v1241_v57 }
 0x2b3   :  { %1449 = vst.msk [vmem:[%s2729_s7 + $0x68] sm:$0xff] %vm138_vm0, %v1233_v21 }
 0x2b5   :  { %v1849_v24 = vpop.f32.mrb[48].mxu0 }
 0x2b6   :  { %v1254_v52 = vadd.f32 %v1849_v24, %v2400_v5  ;;  %v1245_v55 = vpop.f32.mrb[49].mxu0 }
 0x2b7   :  { %v1246_v18 = vadd.f32 %v2400_v5, %v1245_v55  ;;  %v1850_v22 = vpop.f32.mrb[50].mxu0 }
 0x2b8   :  { %1454 = vst.msk [vmem:[%s2729_s7 + $0x90] sm:$0xff] %vm138_vm0, %v1254_v52  ;;  %v1257_v38 = vadd.f32 %v1850_v22, %v2400_v5  ;;  %v1248_v39 = vpop.f32.mrb[51].mxu0 }
 0x2b9   :  { %1452 = vst.msk [vmem:[%s2729_s7 + $0x80] sm:$0xff] %vm138_vm0, %v1246_v18  ;;  %v1249_v40 = vadd.f32 %v2400_v5, %v1248_v39 }
 0x2ba   :  { %1455 = vst.msk [vmem:[%s2729_s7 + $0x98] sm:$0xff] %vm138_vm0, %v1257_v38 }
 0x2bb   :  { %1453 = vst.msk [vmem:[%s2729_s7 + $0x88] sm:$0xff] %vm138_vm0, %v1249_v40 }
 0x2bd   :  { %v1853_v42 = vpop.f32.mrb[52].mxu0 }
 0x2be   :  { %v1270_v43 = vadd.f32 %v1853_v42, %v2400_v5  ;;  %v1261_v44 = vpop.f32.mrb[53].mxu0 }
 0x2bf   :  { %v1262_v45 = vadd.f32 %v2400_v5, %v1261_v44  ;;  %v1854_v46 = vpop.f32.mrb[54].mxu0 }
 0x2c0   :  { %1458 = vst.msk [vmem:[%s2729_s7 + $0xb0] sm:$0xff] %vm138_vm0, %v1270_v43  ;;  %v1273_v47 = vadd.f32 %v1854_v46, %v2400_v5  ;;  %v1264_v48 = vpop.f32.mrb[55].mxu0 }
 0x2c1   :  { %1456 = vst.msk [vmem:[%s2729_s7 + $0xa0] sm:$0xff] %vm138_vm0, %v1262_v45  ;;  %v1265_v49 = vadd.f32 %v2400_v5, %v1264_v48 }
 0x2c2   :  { %1459 = vst.msk [vmem:[%s2729_s7 + $0xb8] sm:$0xff] %vm138_vm0, %v1273_v47 }
 0x2c3   :  { %1457 = vst.msk [vmem:[%s2729_s7 + $0xa8] sm:$0xff] %vm138_vm0, %v1265_v49 }
 0x2c5   :  { %v1857_v50 = vpop.f32.mrb[56].mxu0 }
 0x2c6   :  { %v1286_v51 = vadd.f32 %v1857_v50, %v2400_v5  ;;  %v1277_v53 = vpop.f32.mrb[57].mxu0 }
 0x2c7   :  { %v1278_v54 = vadd.f32 %v2400_v5, %v1277_v53  ;;  %v1858_v56 = vpop.f32.mrb[58].mxu0 }
 0x2c8   :  { %1462 = vst.msk [vmem:[%s2729_s7 + $0xd0] sm:$0xff] %vm138_vm0, %v1286_v51  ;;  %v1289_v58 = vadd.f32 %v1858_v56, %v2400_v5  ;;  %v1280_v59 = vpop.f32.mrb[59].mxu0 }
 0x2c9   :  { %1460 = vst.msk [vmem:[%s2729_s7 + $0xc0] sm:$0xff] %vm138_vm0, %v1278_v54  ;;  %v1281_v61 = vadd.f32 %v2400_v5, %v1280_v59 }
 0x2ca   :  { %1463 = vst.msk [vmem:[%s2729_s7 + $0xd8] sm:$0xff] %vm138_vm0, %v1289_v58 }
 0x2cb   :  { %1461 = vst.msk [vmem:[%s2729_s7 + $0xc8] sm:$0xff] %vm138_vm0, %v1281_v61 }
 0x2cd   :  { %v1861_v62 = vpop.f32.mrb[60].mxu0 }
 0x2ce   :  { %v1302_v63 = vadd.f32 %v1861_v62, %v2400_v5  ;;  %v1293_v0 = vpop.f32.mrb[61].mxu0 }
 0x2cf   :  { %v1294_v1 = vadd.f32 %v2400_v5, %v1293_v0  ;;  %v1862_v2 = vpop.f32.mrb[62].mxu0 }
 0x2d0   :  { %1466 = vst.msk [vmem:[%s2729_s7 + $0xf0] sm:$0xff] %vm138_vm0, %v1302_v63  ;;  %v1305_v3 = vadd.f32 %v1862_v2, %v2400_v5  ;;  %v1296_v4 = vpop.f32.mrb[63].mxu0 }
 0x2d1   :  { %1464 = vst.msk [vmem:[%s2729_s7 + $0xe0] sm:$0xff] %vm138_vm0, %v1294_v1  ;;  %v1297_v6 = vadd.f32 %v2400_v5, %v1296_v4 }
 0x2d2   :  { %1467 = vst.msk [vmem:[%s2729_s7 + $0xf8] sm:$0xff] %vm138_vm0, %v1305_v3 }
 0x2d3   :  { %1465 = vst.msk [vmem:[%s2729_s7 + $0xe8] sm:$0xff] %vm138_vm0, %v1297_v6 }
 0x2d5   :  { %v1865_v7 = vpop.f32.mrb[64].mxu0 }
 0x2d6   :  { %v1318_v8 = vadd.f32 %v1865_v7, %v2400_v5  ;;  %v1309_v9 = vpop.f32.mrb[65].mxu0 }
 0x2d7   :  { %v1310_v26 = vadd.f32 %v2400_v5, %v1309_v9  ;;  %v1866_v10 = vpop.f32.mrb[66].mxu0 }
 0x2d8   :  { %1470 = vst.msk [vmem:[%s2729_s7 + $0x110] sm:$0xff] %vm138_vm0, %v1318_v8  ;;  %v1321_v11 = vadd.f32 %v1866_v10, %v2400_v5  ;;  %v1312_v12 = vpop.f32.mrb[67].mxu0 }
 0x2d9   :  { %1468 = vst.msk [vmem:[%s2729_s7 + $0x100] sm:$0xff] %vm138_vm0, %v1310_v26  ;;  %v1313_v13 = vadd.f32 %v2400_v5, %v1312_v12 }
 0x2da   :  { %1471 = vst.msk [vmem:[%s2729_s7 + $0x118] sm:$0xff] %vm138_vm0, %v1321_v11 }
 0x2db   :  { %1469 = vst.msk [vmem:[%s2729_s7 + $0x108] sm:$0xff] %vm138_vm0, %v1313_v13 }
 0x2dd   :  { %v1869_v14 = vpop.f32.mrb[68].mxu0 }
 0x2de   :  { %v1334_v15 = vadd.f32 %v1869_v14, %v2400_v5  ;;  %v1325_v16 = vpop.f32.mrb[69].mxu0 }
 0x2df   :  { %v1326_v17 = vadd.f32 %v2400_v5, %v1325_v16  ;;  %v1870_v19 = vpop.f32.mrb[70].mxu0 }
 0x2e0   :  { %1474 = vst.msk [vmem:[%s2729_s7 + $0x130] sm:$0xff] %vm138_vm0, %v1334_v15  ;;  %v1337_v20 = vadd.f32 %v1870_v19, %v2400_v5  ;;  %v1328_v23 = vpop.f32.mrb[71].mxu0 }
 0x2e1   :  { %1472 = vst.msk [vmem:[%s2729_s7 + $0x120] sm:$0xff] %vm138_vm0, %v1326_v17  ;;  %v1329_v25 = vadd.f32 %v2400_v5, %v1328_v23 }
 0x2e2   :  { %1475 = vst.msk [vmem:[%s2729_s7 + $0x138] sm:$0xff] %vm138_vm0, %v1337_v20 }
 0x2e3   :  { %1473 = vst.msk [vmem:[%s2729_s7 + $0x128] sm:$0xff] %vm138_vm0, %v1329_v25 }
 0x2e5   :  { %v1873_v27 = vpop.f32.mrb[72].mxu0 }
 0x2e6   :  { %v1350_v28 = vadd.f32 %v1873_v27, %v2400_v5  ;;  %v1341_v30 = vpop.f32.mrb[73].mxu0 }
 0x2e7   :  { %v1342_v31 = vadd.f32 %v2400_v5, %v1341_v30  ;;  %v1874_v32 = vpop.f32.mrb[74].mxu0 }
 0x2e8   :  { %1478 = vst.msk [vmem:[%s2729_s7 + $0x150] sm:$0xff] %vm138_vm0, %v1350_v28  ;;  %v1353_v33 = vadd.f32 %v1874_v32, %v2400_v5  ;;  %v1344_v34 = vpop.f32.mrb[75].mxu0 }
 0x2e9   :  { %1476 = vst.msk [vmem:[%s2729_s7 + $0x140] sm:$0xff] %vm138_vm0, %v1342_v31  ;;  %v1345_v35 = vadd.f32 %v2400_v5, %v1344_v34 }
 0x2ea   :  { %1479 = vst.msk [vmem:[%s2729_s7 + $0x158] sm:$0xff] %vm138_vm0, %v1353_v33 }
 0x2eb   :  { %1477 = vst.msk [vmem:[%s2729_s7 + $0x148] sm:$0xff] %vm138_vm0, %v1345_v35 }
 0x2ed   :  { %v1877_v36 = vpop.f32.mrb[76].mxu0 }
 0x2ee   :  { %v1366_v37 = vadd.f32 %v1877_v36, %v2400_v5  ;;  %v1357_v41 = vpop.f32.mrb[77].mxu0 }
 0x2ef   :  { %v1358_v29 = vadd.f32 %v2400_v5, %v1357_v41  ;;  %v1878_v57 = vpop.f32.mrb[78].mxu0 }
 0x2f0   :  { %1482 = vst.msk [vmem:[%s2729_s7 + $0x170] sm:$0xff] %vm138_vm0, %v1366_v37  ;;  %v1369_v60 = vadd.f32 %v1878_v57, %v2400_v5  ;;  %v1360_v21 = vpop.f32.mrb[79].mxu0 }
 0x2f1   :  { %1480 = vst.msk [vmem:[%s2729_s7 + $0x160] sm:$0xff] %vm138_vm0, %v1358_v29  ;;  %v1361_v24 = vadd.f32 %v2400_v5, %v1360_v21 }
 0x2f2   :  { %1483 = vst.msk [vmem:[%s2729_s7 + $0x178] sm:$0xff] %vm138_vm0, %v1369_v60 }
 0x2f3   :  { %1481 = vst.msk [vmem:[%s2729_s7 + $0x168] sm:$0xff] %vm138_vm0, %v1361_v24 }
 0x2f5   :  { %v1881_v52 = vpop.f32.mrb[80].mxu0 }
 0x2f6   :  { %v1382_v55 = vadd.f32 %v1881_v52, %v2400_v5  ;;  %v1373_v18 = vpop.f32.mrb[81].mxu0 }
 0x2f7   :  { %v1374_v22 = vadd.f32 %v2400_v5, %v1373_v18  ;;  %v1882_v38 = vpop.f32.mrb[82].mxu0 }
 0x2f8   :  { %1486 = vst.msk [vmem:[%s2729_s7 + $0x190] sm:$0xff] %vm138_vm0, %v1382_v55  ;;  %v1385_v39 = vadd.f32 %v1882_v38, %v2400_v5  ;;  %v1376_v40 = vpop.f32.mrb[83].mxu0 }
 0x2f9   :  { %1484 = vst.msk [vmem:[%s2729_s7 + $0x180] sm:$0xff] %vm138_vm0, %v1374_v22  ;;  %v1377_v42 = vadd.f32 %v2400_v5, %v1376_v40 }
 0x2fa   :  { %1487 = vst.msk [vmem:[%s2729_s7 + $0x198] sm:$0xff] %vm138_vm0, %v1385_v39 }
 0x2fb   :  { %1485 = vst.msk [vmem:[%s2729_s7 + $0x188] sm:$0xff] %vm138_vm0, %v1377_v42 }
 0x2fd   :  { %v1885_v43 = vpop.f32.mrb[84].mxu0 }
 0x2fe   :  { %v1398_v44 = vadd.f32 %v1885_v43, %v2400_v5  ;;  %v1389_v45 = vpop.f32.mrb[85].mxu0 }
 0x2ff   :  { %v1390_v46 = vadd.f32 %v2400_v5, %v1389_v45  ;;  %v1886_v47 = vpop.f32.mrb[86].mxu0 }
 0x300   :  { %1490 = vst.msk [vmem:[%s2729_s7 + $0x1b0] sm:$0xff] %vm138_vm0, %v1398_v44  ;;  %v1401_v48 = vadd.f32 %v1886_v47, %v2400_v5  ;;  %v1392_v49 = vpop.f32.mrb[87].mxu0 }
 0x301   :  { %1488 = vst.msk [vmem:[%s2729_s7 + $0x1a0] sm:$0xff] %vm138_vm0, %v1390_v46  ;;  %v1393_v50 = vadd.f32 %v2400_v5, %v1392_v49 }
 0x302   :  { %1491 = vst.msk [vmem:[%s2729_s7 + $0x1b8] sm:$0xff] %vm138_vm0, %v1401_v48 }
 0x303   :  { %1489 = vst.msk [vmem:[%s2729_s7 + $0x1a8] sm:$0xff] %vm138_vm0, %v1393_v50 }
 0x305   :  { %v1889_v51 = vpop.f32.mrb[88].mxu0 }
 0x306   :  { %v1414_v53 = vadd.f32 %v1889_v51, %v2400_v5  ;;  %v1405_v54 = vpop.f32.mrb[89].mxu0 }
 0x307   :  { %v1406_v56 = vadd.f32 %v2400_v5, %v1405_v54  ;;  %v1890_v58 = vpop.f32.mrb[90].mxu0 }
 0x308   :  { %1494 = vst.msk [vmem:[%s2729_s7 + $0x1d0] sm:$0xff] %vm138_vm0, %v1414_v53  ;;  %v1417_v59 = vadd.f32 %v1890_v58, %v2400_v5  ;;  %v1408_v61 = vpop.f32.mrb[91].mxu0 }
 0x309   :  { %1492 = vst.msk [vmem:[%s2729_s7 + $0x1c0] sm:$0xff] %vm138_vm0, %v1406_v56  ;;  %v1409_v62 = vadd.f32 %v2400_v5, %v1408_v61 }
 0x30a   :  { %1495 = vst.msk [vmem:[%s2729_s7 + $0x1d8] sm:$0xff] %vm138_vm0, %v1417_v59 }
 0x30b   :  { %1493 = vst.msk [vmem:[%s2729_s7 + $0x1c8] sm:$0xff] %vm138_vm0, %v1409_v62 }
 0x30d   :  { %v1893_v63 = vpop.f32.mrb[92].mxu0 }
 0x30e   :  { %v1430_v0 = vadd.f32 %v1893_v63, %v2400_v5  ;;  %v1421_v1 = vpop.f32.mrb[93].mxu0 }
 0x30f   :  { %v1422_v2 = vadd.f32 %v2400_v5, %v1421_v1  ;;  %v1894_v3 = vpop.f32.mrb[94].mxu0 }
 0x310   :  { %1498 = vst.msk [vmem:[%s2729_s7 + $0x1f0] sm:$0xff] %vm138_vm0, %v1430_v0  ;;  %v1433_v4 = vadd.f32 %v1894_v3, %v2400_v5  ;;  %v1424_v6 = vpop.f32.mrb[95].mxu0 }
 0x311   :  { %1496 = vst.msk [vmem:[%s2729_s7 + $0x1e0] sm:$0xff] %vm138_vm0, %v1422_v2  ;;  %v1425_v7 = vadd.f32 %v2400_v5, %v1424_v6 }
 0x312   :  { %1499 = vst.msk [vmem:[%s2729_s7 + $0x1f8] sm:$0xff] %vm138_vm0, %v1433_v4 }
 0x313   :  { %1497 = vst.msk [vmem:[%s2729_s7 + $0x1e8] sm:$0xff] %vm138_vm0, %v1425_v7 }

</bundles_post_ra>
